<compile_context>
chip_gen: v7x
topology: tpu7x:2x2x1
jax: 0.10.0
libtpu: 0.0.40
codegen_flags: <defaults>
</compile_context>

<pallas_src>
import functools

import jax
import jax.numpy as jnp
from jax import lax
from jax.experimental import pallas as pl
from jax.experimental.pallas import tpu as pltpu

NEG_INF = float(jnp.finfo(jnp.float32).min)
LN_EPS = 1e-5


def _layer_norm(x, w, b, eps=LN_EPS):
    mu = jnp.mean(x, axis=-1, keepdims=True)
    var = jnp.mean((x - mu) ** 2, axis=-1, keepdims=True)
    return (x - mu) * lax.rsqrt(var + eps) * w + b


# ---------------------------------------------------------------------------
# Kernel: grid = (batch_tiles, num_layers).  Per-layer weights stream HBM->VMEM
# (double buffered); the residual stream is carried across the layer axis in a
# persistent VMEM scratch (init @ layer 0, final LN + store @ last layer).
# ---------------------------------------------------------------------------
def _clip_text_kernel(
    embeds_ref, padbias_ref,
    ln1w_ref, ln1b_ref, qkvw_ref, qkvb_ref, ow_ref, ob_ref,
    ln2w_ref, ln2b_ref, f1w_ref, f1b_ref, f2w_ref, f2b_ref,
    flnw_ref, flnb_ref,
    out_ref,
    x_ref, ctx_ref,                      # persistent VMEM scratch
    *, num_heads, approx_recip,
):
    layer = pl.program_id(1)
    num_layers = pl.num_programs(1)

    Bt, Sp, D = embeds_ref.shape
    hd = D // num_heads
    M = Bt * Sp
    f32 = jnp.float32
    cd = qkvw_ref.dtype                  # matmul-operand dtype (bf16 or f32)

    # ---- residual-stream init (embeddings already contain the position embedding) ----
    @pl.when(layer == 0)
    def _():
        x_ref[...] = embeds_ref[...].astype(f32).reshape(M, D)

    x = x_ref[...]                       # (M, D) f32 residual stream

    # ---- additive mask = causal (in-kernel iota) + key padding bias, reused per head ----
    rows = lax.broadcasted_iota(jnp.int32, (Sp, Sp), 0)
    cols = lax.broadcasted_iota(jnp.int32, (Sp, Sp), 1)
    causal = jnp.where(cols > rows, NEG_INF, 0.0).astype(f32)          # (Sp, Sp)
    # clamp so NEG_INF + NEG_INF never overflows to -inf (keeps softmax NaN-free)
    bias = jnp.maximum(causal[None, :, :] + padbias_ref[...], NEG_INF)  # (Bt, Sp, Sp)

    def mm(a, w):                        # MXU matmul, f32 accumulation
        return jnp.dot(a, w, preferred_element_type=f32)

    # ---- self-attention block ----
    h = _layer_norm(x, ln1w_ref[0], ln1b_ref[0]).astype(cd)            # cast once
    qkv = (mm(h, qkvw_ref[0]) + qkvb_ref[0]).astype(cd)                # (M, 3D), scale folded
    q = qkv[:, 0 * D:1 * D]
    k = qkv[:, 1 * D:2 * D]
    v = qkv[:, 2 * D:3 * D]

    for hh in range(num_heads):          # H blocks only (batched over Bt inside)
        c0 = hh * hd
        q_h = q[:, c0:c0 + hd].reshape(Bt, Sp, hd)
        k_h = k[:, c0:c0 + hd].reshape(Bt, Sp, hd)
        v_h = v[:, c0:c0 + hd].reshape(Bt, Sp, hd)
        # scores: contract head_dim directly (no explicit transpose), batched over Bt
        s = lax.dot_general(q_h, k_h, (((2,), (2,)), ((0,), (0,))),
                            preferred_element_type=f32)                # (Bt, Sp, Sp)
        s = s + bias
        s = s - jnp.max(s, axis=-1, keepdims=True)
        p = jnp.exp(s)
        p = p * pl.reciprocal(jnp.sum(p, axis=-1, keepdims=True), approx=approx_recip)
        ctx = lax.dot_general(p.astype(cd), v_h, (((2,), (1,)), ((0,), (0,))),
                              preferred_element_type=f32)              # (Bt, Sp, hd)
        ctx_ref[:, c0:c0 + hd] = ctx.reshape(M, hd).astype(cd)

    # single full-K output projection over the whole (M, D) context
    x = x + mm(ctx_ref[...], ow_ref[0]) + ob_ref[0]

    # ---- MLP block (quick_gelu) ----
    h = _layer_norm(x, ln2w_ref[0], ln2b_ref[0]).astype(cd)
    h = mm(h, f1w_ref[0]) + f1b_ref[0]                                 # (M, I) f32
    h = h * jax.nn.sigmoid(1.702 * h)                                  # quick_gelu
    x = x + mm(h.astype(cd), f2w_ref[0]) + f2b_ref[0]
    x_ref[...] = x

    # ---- final layer norm: last layer step only ----
    @pl.when(layer == num_layers - 1)
    def _():
        xf = _layer_norm(x, flnw_ref[...], flnb_ref[...])
        out_ref[...] = xf.reshape(Bt, Sp, D).astype(out_ref.dtype)


# ---------------------------------------------------------------------------
# VMEM budgeting helpers
# ---------------------------------------------------------------------------
def _tpu_vmem_and_target_rows():
    vmem = 64 * 1024 * 1024              # conservative default (v7x per-core VMEM)
    target = 384                         # Bt*Sp rows aimed near the HBM/MXU balance point
    try:
        info = pltpu.get_tpu_info()
        cap = getattr(info, "vmem_capacity_bytes", None)
        if cap:
            vmem = int(cap)
            # 128-MiB-VMEM chips (v5e/v6e): v6e needs ~640 rows to reach its ~650 FLOP/byte
            # HBM balance; 64-MiB chips (v7x) are balanced around ~320-384 rows.
            target = 640 if vmem >= 96 * 1024 * 1024 else 384
    except Exception:
        pass
    return vmem, target


def _estimate_vmem_bytes(batch_tile, Sp, D, I, cd_bytes):
    """Rough per-core VMEM footprint of one grid step (used to cap batch_tile)."""
    M = batch_tile * Sp
    weights = 2 * ((4 * D * D + 2 * D * I) * cd_bytes + (10 * D + 2 * I) * 4)  # dbl-buffered
    io = 2 * (2 * M * D * 4 + batch_tile * Sp * 4)        # embeds in + hidden out + pad bias
    scratch = M * D * (4 + cd_bytes)                      # residual + context scratch
    transient = (M * 3 * D * cd_bytes + M * I * 4         # qkv, MLP intermediate
                 + 3 * batch_tile * Sp * Sp * 4           # mask / scores / probs
                 + 2 * M * D * 4)                         # misc live f32
    return int(1.15 * (weights + io + scratch + transient))


# ---------------------------------------------------------------------------
# One-time parameter preparation (cast / fuse outside the per-call wrapper).
# ---------------------------------------------------------------------------
def prepare_params(params, *, num_heads, matmul_dtype=jnp.bfloat16):
    f32 = jnp.float32
    D = params["q_w"].shape[-1]
    hd = D // num_heads
    scale = jnp.asarray(hd ** -0.5, f32)

    def b2(name):                        # (L, X) -> (L, 1, X) f32
        return params[name].astype(f32)[:, None, :]

    qkv_w = jnp.concatenate([params["q_w"].astype(f32) * scale,
                             params["k_w"].astype(f32),
                             params["v_w"].astype(f32)], axis=-1)       # (L, D, 3D)
    qkv_b = jnp.concatenate([params["q_b"].astype(f32) * scale,
                             params["k_b"].astype(f32),
                             params["v_b"].astype(f32)], axis=-1)[:, None, :]

    return {
        "pos_emb": params["pos_emb"].astype(f32),
        "ln1_w": b2("ln1_w"), "ln1_b": b2("ln1_b"),
        "qkv_w": qkv_w.astype(matmul_dtype), "qkv_b": qkv_b,
        "o_w": params["o_w"].astype(matmul_dtype), "o_b": b2("o_b"),
        "ln2_w": b2("ln2_w"), "ln2_b": b2("ln2_b"),
        "f1_w": params["f1_w"].astype(matmul_dtype), "f1_b": b2("f1_b"),
        "f2_w": params["f2_w"].astype(matmul_dtype), "f2_b": b2("f2_b"),
        "fln_w": params["fln_w"].astype(f32).reshape(1, D),
        "fln_b": params["fln_b"].astype(f32).reshape(1, D),
    }


# ---------------------------------------------------------------------------
# Forward wrapper (matches CustomTextEncoder.forward: returns (last_hidden, pooled)).
# ---------------------------------------------------------------------------
def custom_text_encoder_forward(input_ids, inputs_embeds, attention_mask, prepped, *,
                                num_heads, eos_token_id=2,
                                batch_tile=None, target_rows=None):
    B, S, D = inputs_embeds.shape
    L = prepped["ln1_w"].shape[0]
    I = prepped["f1_w"].shape[-1]
    f32 = jnp.float32
    cd = prepped["qkv_w"].dtype
    cd_bytes = jnp.dtype(cd).itemsize

    # rows (queries / residual stream) only need sublane (8) alignment, not 128
    Sp = pl.cdiv(S, 8) * 8

    vmem_cap, default_target = _tpu_vmem_and_target_rows()
    if target_rows is None:
        target_rows = default_target
    budget = int(0.80 * vmem_cap)
    if batch_tile is None:
        bt = max(1, min(B, pl.cdiv(target_rows, Sp)))
        while bt > 1 and _estimate_vmem_bytes(bt, Sp, D, I, cd_bytes) > budget:
            bt -= 1
        batch_tile = bt
    n_bt = pl.cdiv(B, batch_tile)
    Bp = n_bt * batch_tile

    # embeddings (inputs_embeds + position embedding) hoisted into the wrapper
    x0 = inputs_embeds.astype(f32) + prepped["pos_emb"][:S][None]
    x0 = jnp.pad(x0, ((0, Bp - B), (0, Sp - S), (0, 0)))

    # key-padding additive bias only (the causal part is built in-kernel)
    if attention_mask is None:
        attention_mask = jnp.ones((B, S), jnp.int32)
    valid = jnp.pad(attention_mask.astype(f32), ((0, Bp - B), (0, Sp - S)))
    pad_bias = jnp.where(valid > 0.5, 0.0, NEG_INF).astype(f32)[:, None, :]   # (Bp,1,Sp)

    layer_args = [prepped[k] for k in
                  ("ln1_w", "ln1_b", "qkv_w", "qkv_b", "o_w", "o_b",
                   "ln2_w", "ln2_b", "f1_w", "f1_b", "f2_w", "f2_b")]

    def layer_spec(a):                   # stream one layer's slice per grid step
        return pl.BlockSpec((1,) + a.shape[1:],
                            lambda b, l, nd=a.ndim: (l,) + (0,) * (nd - 1))

    def fixed_spec(a):                   # layer/batch-invariant input
        return pl.BlockSpec(a.shape, lambda b, l, nd=a.ndim: (0,) * nd)

    in_specs = (
        [pl.BlockSpec((batch_tile, Sp, D), lambda b, l: (b, 0, 0)),     # embeddings
         pl.BlockSpec((batch_tile, 1, Sp), lambda b, l: (b, 0, 0))]     # pad bias
        + [layer_spec(a) for a in layer_args]
        + [fixed_spec(prepped["fln_w"]), fixed_spec(prepped["fln_b"])]
    )

    kernel = functools.partial(_clip_text_kernel, num_heads=num_heads,
                               approx_recip=bool(cd != jnp.float32))

    out = pl.pallas_call(
        kernel,
        grid=(n_bt, L),
        in_specs=in_specs,
        out_specs=pl.BlockSpec((batch_tile, Sp, D), lambda b, l: (b, 0, 0)),
        out_shape=jax.ShapeDtypeStruct((Bp, Sp, D), f32),
        scratch_shapes=[
            pltpu.VMEM((batch_tile * Sp, D), f32),   # residual stream (carried over layers)
            pltpu.VMEM((batch_tile * Sp, D), cd),    # per-head attention context
        ],
        compiler_params=pltpu.CompilerParams(
            dimension_semantics=("parallel", "arbitrary"),   # batch tiles parallel, layers sequential
            vmem_limit_bytes=min(int(0.90 * vmem_cap), 112 * 1024 * 1024),
        ),
    )(x0, pad_bias, *layer_args, prepped["fln_w"], prepped["fln_b"])

    last_hidden = out[:B, :S, :]

    # pooled output computed in the wrapper (drops the onehot input / M=1 matmuls)
    ids = input_ids.astype(jnp.int32)
    if eos_token_id == 2:
        eos_idx = jnp.argmax(ids, axis=-1)
    else:
        eos_idx = jnp.argmax((ids == eos_token_id).astype(jnp.int32), axis=-1)
    pooled = jnp.take_along_axis(last_hidden, eos_idx[:, None, None], axis=1)[:, 0, :]
    return last_hidden, pooled


# ---------------------------------------------------------------------------
# Pure-JAX reference (same math, used only to validate the kernel).
# ---------------------------------------------------------------------------
def reference_forward(input_ids, inputs_embeds, attention_mask, params,
                      *, num_heads, eos_token_id=2):
    B, S, D = inputs_embeds.shape
    L = params["ln1_w"].shape[0]
    hd = D // num_heads
    scale = hd ** -0.5
    p = params

    x = inputs_embeds.astype(jnp.float32) + p["pos_emb"][:S][None]
    idx = jnp.arange(S)
    causal = jnp.where(idx[None, :] > idx[:, None], NEG_INF, 0.0)
    inv = 1.0 - attention_mask.astype(jnp.float32)
    bias = jnp.where(inv.astype(bool), NEG_INF, inv)
    mask = causal[None, None] + bias[:, None, None, :]          # (B,1,S,S)

    for l in range(L):
        res = x
        h = _layer_norm(x, p["ln1_w"][l], p["ln1_b"][l])
        q = (h @ p["q_w"][l] + p["q_b"][l]) * scale
        k = h @ p["k_w"][l] + p["k_b"][l]
        v = h @ p["v_w"][l] + p["v_b"][l]
        split = lambda t: t.reshape(B, S, num_heads, hd).transpose(0, 2, 1, 3)
        qh, kh, vh = split(q), split(k), split(v)
        w = jnp.einsum("bhqd,bhkd->bhqk", qh, kh) + mask
        w = jax.nn.softmax(w, axis=-1)
        o = jnp.einsum("bhqk,bhkd->bhqd", w, vh)
        o = o.transpose(0, 2, 1, 3).reshape(B, S, D)
        o = o @ p["o_w"][l] + p["o_b"][l]
        x = res + o
        res = x
        h = _layer_norm(x, p["ln2_w"][l], p["ln2_b"][l])
        h = h @ p["f1_w"][l] + p["f1_b"][l]
        h = h * jax.nn.sigmoid(1.702 * h)
        h = h @ p["f2_w"][l] + p["f2_b"][l]
        x = res + h

    x = _layer_norm(x, p["fln_w"][0], p["fln_b"][0])
    if eos_token_id == 2:
        eos_idx = jnp.argmax(input_ids.astype(jnp.int32), axis=-1)
    else:
        eos_idx = jnp.argmax((input_ids.astype(jnp.int32) == eos_token_id).astype(jnp.int32), axis=-1)
    pooled = x[jnp.arange(B), eos_idx]
    return x, pooled


def make_params(key, *, num_layers, hidden, intermediate, max_seq):
    ks = jax.random.split(key, 8)
    n = lambda k, shape, s=0.02: (s * jax.random.normal(k, shape)).astype(jnp.float32)
    L, D, I = num_layers, hidden, intermediate
    return {
        "pos_emb": n(ks[0], (max_seq, D)),
        "ln1_w": jnp.ones((L, D), jnp.float32), "ln1_b": jnp.zeros((L, D), jnp.float32),
        "q_w": n(ks[1], (L, D, D)), "q_b": jnp.zeros((L, D), jnp.float32),
        "k_w": n(ks[2], (L, D, D)), "k_b": jnp.zeros((L, D), jnp.float32),
        "v_w": n(ks[3], (L, D, D)), "v_b": jnp.zeros((L, D), jnp.float32),
        "o_w": n(ks[4], (L, D, D)), "o_b": jnp.zeros((L, D), jnp.float32),
        "ln2_w": jnp.ones((L, D), jnp.float32), "ln2_b": jnp.zeros((L, D), jnp.float32),
        "f1_w": n(ks[5], (L, D, I)), "f1_b": jnp.zeros((L, I), jnp.float32),
        "f2_w": n(ks[6], (L, I, D)), "f2_b": jnp.zeros((L, D), jnp.float32),
        "fln_w": jnp.ones((1, D), jnp.float32), "fln_b": jnp.zeros((1, D), jnp.float32),
    }


if __name__ == "__main__":
    B, S, D, H, L, I = 2, 8, 32, 2, 2, 64

    key = jax.random.PRNGKey(0)
    k_par, k_emb, k_ids = jax.random.split(key, 3)

    params = make_params(k_par, num_layers=L, hidden=D, intermediate=I, max_seq=S)
    inputs_embeds = (0.02 * jax.random.normal(k_emb, (B, S, D))).astype(jnp.float32)
    input_ids = jax.random.randint(k_ids, (B, S), 3, 100, dtype=jnp.int32)
    # place an eos-like high token near the end of each sequence (argmax target)
    input_ids = input_ids.at[:, S - 2].set(4999)
    # trailing key-padding on the second sequence to exercise the padding-mask path
    attention_mask = jnp.ones((B, S), jnp.int32).at[1, S - 1].set(0)

    ref_hidden, ref_pooled = reference_forward(
        input_ids, inputs_embeds, attention_mask, params, num_heads=H, eos_token_id=2)

    # f32 matmul path: tight correctness check (exact softmax reciprocal).
    prepped32 = prepare_params(params, num_heads=H, matmul_dtype=jnp.float32)
    lh32, pooled32 = custom_text_encoder_forward(
        input_ids, inputs_embeds, attention_mask, prepped32, num_heads=H, eos_token_id=2)
    jax.block_until_ready((lh32, pooled32))
    assert lh32.shape == (B, S, D) and pooled32.shape == (B, D)
    assert jnp.allclose(lh32, ref_hidden, atol=5e-3, rtol=5e-3)
    assert jnp.allclose(pooled32, ref_pooled, atol=5e-3, rtol=5e-3)

    # bf16 matmul path (performance dtype): loose check vs the f32 reference.
    prepped16 = prepare_params(params, num_heads=H, matmul_dtype=jnp.bfloat16)
    lh16, pooled16 = custom_text_encoder_forward(
        input_ids, inputs_embeds, attention_mask, prepped16, num_heads=H, eos_token_id=2)
    jax.block_until_ready((lh16, pooled16))
    assert lh16.shape == (B, S, D) and pooled16.shape == (B, D)
    assert jnp.allclose(lh16, ref_hidden, atol=1e-1, rtol=1e-1)
    assert jnp.allclose(pooled16, ref_pooled, atol=1e-1, rtol=1e-1)

    print("KERNEL_OK")
</pallas_src>

<mosaic_0001>
module attributes {stable_mosaic.version = 11 : i64} {
  func.func @_clip_text_kernel(%arg0: i32, %arg1: i32, %arg2: memref<2x8x32xf32, #tpu.memory_space<vmem>>, %arg3: memref<2x1x8xf32, #tpu.memory_space<vmem>>, %arg4: memref<1x1x32xf32, #tpu.memory_space<vmem>>, %arg5: memref<1x1x32xf32, #tpu.memory_space<vmem>>, %arg6: memref<1x32x96xf32, #tpu.memory_space<vmem>>, %arg7: memref<1x1x96xf32, #tpu.memory_space<vmem>>, %arg8: memref<1x32x32xf32, #tpu.memory_space<vmem>>, %arg9: memref<1x1x32xf32, #tpu.memory_space<vmem>>, %arg10: memref<1x1x32xf32, #tpu.memory_space<vmem>>, %arg11: memref<1x1x32xf32, #tpu.memory_space<vmem>>, %arg12: memref<1x32x64xf32, #tpu.memory_space<vmem>>, %arg13: memref<1x1x64xf32, #tpu.memory_space<vmem>>, %arg14: memref<1x64x32xf32, #tpu.memory_space<vmem>>, %arg15: memref<1x1x32xf32, #tpu.memory_space<vmem>>, %arg16: memref<1x32xf32, #tpu.memory_space<vmem>>, %arg17: memref<1x32xf32, #tpu.memory_space<vmem>>, %arg18: memref<2x8x32xf32, #tpu.memory_space<vmem>>, %arg19: memref<16x32xf32, #tpu.memory_space<vmem>>, %arg20: memref<16x32xf32, #tpu.memory_space<vmem>>) attributes {dimension_semantics = [#tpu.dimension_semantics<parallel>, #tpu.dimension_semantics<arbitrary>], iteration_bounds = array<i64: 1, 2>, scalar_prefetch = 0 : i64, scratch_operands = 2 : i64, tpu.core_type = #tpu.core_type<tc>, window_params = [{transform_indices = @transform_0, window_bounds = array<i64: 2, 8, 32>}, {transform_indices = @transform_1, window_bounds = array<i64: 2, 1, 8>}, {transform_indices = @transform_2, window_bounds = array<i64: 1, 1, 32>}, {transform_indices = @transform_3, window_bounds = array<i64: 1, 1, 32>}, {transform_indices = @transform_4, window_bounds = array<i64: 1, 32, 96>}, {transform_indices = @transform_5, window_bounds = array<i64: 1, 1, 96>}, {transform_indices = @transform_6, window_bounds = array<i64: 1, 32, 32>}, {transform_indices = @transform_7, window_bounds = array<i64: 1, 1, 32>}, {transform_indices = @transform_8, window_bounds = array<i64: 1, 1, 32>}, {transform_indices = @transform_9, window_bounds = array<i64: 1, 1, 32>}, {transform_indices = @transform_10, window_bounds = array<i64: 1, 32, 64>}, {transform_indices = @transform_11, window_bounds = array<i64: 1, 1, 64>}, {transform_indices = @transform_12, window_bounds = array<i64: 1, 64, 32>}, {transform_indices = @transform_13, window_bounds = array<i64: 1, 1, 32>}, {pipeline_mode = #tpu.pipeline_mode<synchronous>, transform_indices = @transform_14, window_bounds = array<i64: 1, 32>}, {pipeline_mode = #tpu.pipeline_mode<synchronous>, transform_indices = @transform_15, window_bounds = array<i64: 1, 32>}, {transform_indices = @transform_16, window_bounds = array<i64: 2, 8, 32>}]} {
    %c0_i32 = arith.constant 0 : i32
    %0 = arith.cmpi eq, %arg1, %c0_i32 : i32
    %1 = arith.extui %0 : i1 to i32
    %c0_i32_0 = arith.constant 0 : i32
    %2 = arith.cmpi ne, %1, %c0_i32_0 : i32
    scf.if %2 {
      %c0_75 = arith.constant 0 : index
      %c0_76 = arith.constant 0 : index
      %c0_77 = arith.constant 0 : index
      %157 = vector.load %arg2[%c0_75, %c0_76, %c0_77] : memref<2x8x32xf32, #tpu.memory_space<vmem>>, vector<2x8x32xf32>
      %158 = vector.shape_cast %157 : vector<2x8x32xf32> to vector<16x32xf32>
      %c0_78 = arith.constant 0 : index
      %c0_79 = arith.constant 0 : index
      %159 = vector.load %arg19[%c0_78, %c0_79] : memref<16x32xf32, #tpu.memory_space<vmem>>, vector<16x32xf32>
      tpu.vector_store %arg19[%c0_78, %c0_79], %158 {strides = array<i32>} : memref<16x32xf32, #tpu.memory_space<vmem>>, vector<16x32xf32>,
    } else {
    }
    %c0 = arith.constant 0 : index
    %c0_1 = arith.constant 0 : index
    %3 = vector.load %arg19[%c0, %c0_1] : memref<16x32xf32, #tpu.memory_space<vmem>>, vector<16x32xf32>
    %4 = tpu.iota {dimensions = array<i32: 0>} : vector<8x8xi32>
    %5 = tpu.iota {dimensions = array<i32: 1>} : vector<8x8xi32>
    %6 = arith.cmpi sgt, %5, %4 : vector<8x8xi32>
    %cst = arith.constant -3.40282347E+38 : f32
    %cst_2 = arith.constant 0.000000e+00 : f32
    %7 = vector.broadcast %cst : f32 to vector<8x8xf32>
    %8 = vector.broadcast %cst_2 : f32 to vector<8x8xf32>
    %9 = arith.select %6, %7, %8 : vector<8x8xi1>, vector<8x8xf32>
    %10 = vector.shape_cast %9 : vector<8x8xf32> to vector<1x8x8xf32>
    %c0_3 = arith.constant 0 : index
    %c0_4 = arith.constant 0 : index
    %c0_5 = arith.constant 0 : index
    %11 = vector.load %arg3[%c0_3, %c0_4, %c0_5] : memref<2x1x8xf32, #tpu.memory_space<vmem>>, vector<2x1x8xf32>
    %12 = vector.broadcast %10 : vector<1x8x8xf32> to vector<2x8x8xf32>
    %13 = vector.broadcast %11 : vector<2x1x8xf32> to vector<2x8x8xf32>
    %14 = arith.addf %12, %13 : vector<2x8x8xf32>
    %cst_6 = arith.constant -3.40282347E+38 : f32
    %15 = vector.broadcast %cst_6 : f32 to vector<2x8x8xf32>
    %16 = arith.maximumf %14, %15 : vector<2x8x8xf32>
    %c0_7 = arith.constant 0 : index
    %c0_8 = arith.constant 0 : index
    %c0_9 = arith.constant 0 : index
    %17 = vector.load %arg4[%c0_7, %c0_8, %c0_9] : memref<1x1x32xf32, #tpu.memory_space<vmem>>, vector<1x1x32xf32>
    %18 = vector.shape_cast %17 : vector<1x1x32xf32> to vector<1x32xf32>
    %c0_10 = arith.constant 0 : index
    %c0_11 = arith.constant 0 : index
    %c0_12 = arith.constant 0 : index
    %19 = vector.load %arg5[%c0_10, %c0_11, %c0_12] : memref<1x1x32xf32, #tpu.memory_space<vmem>>, vector<1x1x32xf32>
    %20 = vector.shape_cast %19 : vector<1x1x32xf32> to vector<1x32xf32>
    %cst_13 = arith.constant dense<0.000000e+00> : vector<16xf32>
    %21 = vector.multi_reduction <add>, %3, %cst_13 [1] : vector<16x32xf32> to vector<16xf32>
    %22 = vector.shape_cast %21 : vector<16xf32> to vector<16x1xf32>
    %cst_14 = arith.constant 3.200000e+01 : f32
    %23 = vector.broadcast %cst_14 : f32 to vector<16x1xf32>
    %24 = arith.divf %22, %23 : vector<16x1xf32>
    %25 = vector.broadcast %24 : vector<16x1xf32> to vector<16x32xf32>
    %26 = arith.subf %3, %25 : vector<16x32xf32>
    %27 = arith.mulf %26, %26 : vector<16x32xf32>
    %cst_15 = arith.constant dense<0.000000e+00> : vector<16xf32>
    %28 = vector.multi_reduction <add>, %27, %cst_15 [1] : vector<16x32xf32> to vector<16xf32>
    %29 = vector.shape_cast %28 : vector<16xf32> to vector<16x1xf32>
    %cst_16 = arith.constant 3.200000e+01 : f32
    %30 = vector.broadcast %cst_16 : f32 to vector<16x1xf32>
    %31 = arith.divf %29, %30 : vector<16x1xf32>
    %32 = vector.broadcast %24 : vector<16x1xf32> to vector<16x32xf32>
    %33 = arith.subf %3, %32 : vector<16x32xf32>
    %cst_17 = arith.constant 9.99999974E-6 : f32
    %34 = vector.broadcast %cst_17 : f32 to vector<16x1xf32>
    %35 = arith.addf %31, %34 : vector<16x1xf32>
    %36 = math.rsqrt %35 : vector<16x1xf32>
    %37 = vector.broadcast %36 : vector<16x1xf32> to vector<16x32xf32>
    %38 = arith.mulf %33, %37 : vector<16x32xf32>
    %39 = vector.broadcast %18 : vector<1x32xf32> to vector<16x32xf32>
    %40 = arith.mulf %38, %39 : vector<16x32xf32>
    %41 = vector.broadcast %20 : vector<1x32xf32> to vector<16x32xf32>
    %42 = arith.addf %40, %41 : vector<16x32xf32>
    %c0_18 = arith.constant 0 : index
    %c0_19 = arith.constant 0 : index
    %c0_20 = arith.constant 0 : index
    %43 = vector.load %arg6[%c0_18, %c0_19, %c0_20] : memref<1x32x96xf32, #tpu.memory_space<vmem>>, vector<1x32x96xf32>
    %44 = vector.shape_cast %43 : vector<1x32x96xf32> to vector<32x96xf32>
    %cst_21 = arith.constant dense<0.000000e+00> : vector<16x96xf32>
    %45 = tpu.matmul %42, %44, %cst_21 {dimension_numbers = #tpu.dot_dimension_numbers<[1], [0], [0], [1], [0, 0, 1, 1], [], []>} : vector<16x32xf32>, vector<32x96xf32>, vector<16x96xf32> -> vector<16x96xf32>
    %c0_22 = arith.constant 0 : index
    %c0_23 = arith.constant 0 : index
    %c0_24 = arith.constant 0 : index
    %46 = vector.load %arg7[%c0_22, %c0_23, %c0_24] : memref<1x1x96xf32, #tpu.memory_space<vmem>>, vector<1x1x96xf32>
    %47 = vector.shape_cast %46 : vector<1x1x96xf32> to vector<1x96xf32>
    %48 = vector.broadcast %47 : vector<1x96xf32> to vector<16x96xf32>
    %49 = arith.addf %45, %48 : vector<16x96xf32>
    %50 = vector.extract_strided_slice %49 {offsets = [0, 0], sizes = [16, 32], strides = [1, 1]} : vector<16x96xf32> to vector<16x32xf32>
    %51 = vector.extract_strided_slice %49 {offsets = [0, 32], sizes = [16, 32], strides = [1, 1]} : vector<16x96xf32> to vector<16x32xf32>
    %52 = vector.extract_strided_slice %49 {offsets = [0, 64], sizes = [16, 32], strides = [1, 1]} : vector<16x96xf32> to vector<16x32xf32>
    %53 = vector.extract_strided_slice %50 {offsets = [0, 0], sizes = [16, 16], strides = [1, 1]} : vector<16x32xf32> to vector<16x16xf32>
    %54 = vector.shape_cast %53 : vector<16x16xf32> to vector<2x8x16xf32>
    %55 = vector.extract_strided_slice %51 {offsets = [0, 0], sizes = [16, 16], strides = [1, 1]} : vector<16x32xf32> to vector<16x16xf32>
    %56 = vector.shape_cast %55 : vector<16x16xf32> to vector<2x8x16xf32>
    %57 = vector.extract_strided_slice %52 {offsets = [0, 0], sizes = [16, 16], strides = [1, 1]} : vector<16x32xf32> to vector<16x16xf32>
    %58 = vector.shape_cast %57 : vector<16x16xf32> to vector<2x8x16xf32>
    %cst_25 = arith.constant dense<0.000000e+00> : vector<2x8x8xf32>
    %59 = tpu.matmul %54, %56, %cst_25 {dimension_numbers = #tpu.dot_dimension_numbers<[2], [2], [1], [1], [0, 0, 0, 1, 1, 1], [0], [0]>} : vector<2x8x16xf32>, vector<2x8x16xf32>, vector<2x8x8xf32> -> vector<2x8x8xf32>
    %60 = arith.addf %59, %16 : vector<2x8x8xf32>
    %cst_26 = arith.constant dense<0xFF800000> : vector<2x8xf32>
    %61 = vector.multi_reduction <maximumf>, %60, %cst_26 [2] : vector<2x8x8xf32> to vector<2x8xf32>
    %62 = vector.shape_cast %61 : vector<2x8xf32> to vector<2x8x1xf32>
    %63 = vector.broadcast %62 : vector<2x8x1xf32> to vector<2x8x8xf32>
    %64 = arith.subf %60, %63 : vector<2x8x8xf32>
    %65 = math.exp %64 : vector<2x8x8xf32>
    %cst_27 = arith.constant dense<0.000000e+00> : vector<2x8xf32>
    %66 = vector.multi_reduction <add>, %65, %cst_27 [2] : vector<2x8x8xf32> to vector<2x8xf32>
    %67 = vector.shape_cast %66 : vector<2x8xf32> to vector<2x8x1xf32>
    %68 = tpu.reciprocal %67 : vector<2x8x1xf32> -> vector<2x8x1xf32>
    %69 = vector.broadcast %68 : vector<2x8x1xf32> to vector<2x8x8xf32>
    %70 = arith.mulf %65, %69 : vector<2x8x8xf32>
    %cst_28 = arith.constant dense<0.000000e+00> : vector<2x8x16xf32>
    %71 = tpu.matmul %70, %58, %cst_28 {dimension_numbers = #tpu.dot_dimension_numbers<[2], [1], [1], [2], [0, 0, 0, 1, 1, 2], [0], [0]>} : vector<2x8x8xf32>, vector<2x8x16xf32>, vector<2x8x16xf32> -> vector<2x8x16xf32>
    %72 = vector.shape_cast %71 : vector<2x8x16xf32> to vector<16x16xf32>
    %c0_29 = arith.constant 0 : index
    %c0_30 = arith.constant 0 : index
    %73 = vector.load %arg20[%c0_29, %c0_30] : memref<16x32xf32, #tpu.memory_space<vmem>>, vector<16x16xf32>
    tpu.vector_store %arg20[%c0_29, %c0_30], %72 {strides = array<i32>} : memref<16x32xf32, #tpu.memory_space<vmem>>, vector<16x16xf32>,
    %74 = vector.extract_strided_slice %50 {offsets = [0, 16], sizes = [16, 16], strides = [1, 1]} : vector<16x32xf32> to vector<16x16xf32>
    %75 = vector.shape_cast %74 : vector<16x16xf32> to vector<2x8x16xf32>
    %76 = vector.extract_strided_slice %51 {offsets = [0, 16], sizes = [16, 16], strides = [1, 1]} : vector<16x32xf32> to vector<16x16xf32>
    %77 = vector.shape_cast %76 : vector<16x16xf32> to vector<2x8x16xf32>
    %78 = vector.extract_strided_slice %52 {offsets = [0, 16], sizes = [16, 16], strides = [1, 1]} : vector<16x32xf32> to vector<16x16xf32>
    %79 = vector.shape_cast %78 : vector<16x16xf32> to vector<2x8x16xf32>
    %cst_31 = arith.constant dense<0.000000e+00> : vector<2x8x8xf32>
    %80 = tpu.matmul %75, %77, %cst_31 {dimension_numbers = #tpu.dot_dimension_numbers<[2], [2], [1], [1], [0, 0, 0, 1, 1, 1], [0], [0]>} : vector<2x8x16xf32>, vector<2x8x16xf32>, vector<2x8x8xf32> -> vector<2x8x8xf32>
    %81 = arith.addf %80, %16 : vector<2x8x8xf32>
    %cst_32 = arith.constant dense<0xFF800000> : vector<2x8xf32>
    %82 = vector.multi_reduction <maximumf>, %81, %cst_32 [2] : vector<2x8x8xf32> to vector<2x8xf32>
    %83 = vector.shape_cast %82 : vector<2x8xf32> to vector<2x8x1xf32>
    %84 = vector.broadcast %83 : vector<2x8x1xf32> to vector<2x8x8xf32>
    %85 = arith.subf %81, %84 : vector<2x8x8xf32>
    %86 = math.exp %85 : vector<2x8x8xf32>
    %cst_33 = arith.constant dense<0.000000e+00> : vector<2x8xf32>
    %87 = vector.multi_reduction <add>, %86, %cst_33 [2] : vector<2x8x8xf32> to vector<2x8xf32>
    %88 = vector.shape_cast %87 : vector<2x8xf32> to vector<2x8x1xf32>
    %89 = tpu.reciprocal %88 : vector<2x8x1xf32> -> vector<2x8x1xf32>
    %90 = vector.broadcast %89 : vector<2x8x1xf32> to vector<2x8x8xf32>
    %91 = arith.mulf %86, %90 : vector<2x8x8xf32>
    %cst_34 = arith.constant dense<0.000000e+00> : vector<2x8x16xf32>
    %92 = tpu.matmul %91, %79, %cst_34 {dimension_numbers = #tpu.dot_dimension_numbers<[2], [1], [1], [2], [0, 0, 0, 1, 1, 2], [0], [0]>} : vector<2x8x8xf32>, vector<2x8x16xf32>, vector<2x8x16xf32> -> vector<2x8x16xf32>
    %93 = vector.shape_cast %92 : vector<2x8x16xf32> to vector<16x16xf32>
    %c0_35 = arith.constant 0 : index
    %c16 = arith.constant 16 : index
    %94 = vector.load %arg20[%c0_35, %c16] : memref<16x32xf32, #tpu.memory_space<vmem>>, vector<16x16xf32>
    tpu.vector_store %arg20[%c0_35, %c16], %93 {strides = array<i32>} : memref<16x32xf32, #tpu.memory_space<vmem>>, vector<16x16xf32>,
    %c0_36 = arith.constant 0 : index
    %c0_37 = arith.constant 0 : index
    %95 = vector.load %arg20[%c0_36, %c0_37] : memref<16x32xf32, #tpu.memory_space<vmem>>, vector<16x32xf32>
    %c0_38 = arith.constant 0 : index
    %c0_39 = arith.constant 0 : index
    %c0_40 = arith.constant 0 : index
    %96 = vector.load %arg8[%c0_38, %c0_39, %c0_40] : memref<1x32x32xf32, #tpu.memory_space<vmem>>, vector<1x32x32xf32>
    %97 = vector.shape_cast %96 : vector<1x32x32xf32> to vector<32x32xf32>
    %cst_41 = arith.constant dense<0.000000e+00> : vector<16x32xf32>
    %98 = tpu.matmul %95, %97, %cst_41 {dimension_numbers = #tpu.dot_dimension_numbers<[1], [0], [0], [1], [0, 0, 1, 1], [], []>} : vector<16x32xf32>, vector<32x32xf32>, vector<16x32xf32> -> vector<16x32xf32>
    %99 = arith.addf %3, %98 : vector<16x32xf32>
    %c0_42 = arith.constant 0 : index
    %c0_43 = arith.constant 0 : index
    %c0_44 = arith.constant 0 : index
    %100 = vector.load %arg9[%c0_42, %c0_43, %c0_44] : memref<1x1x32xf32, #tpu.memory_space<vmem>>, vector<1x1x32xf32>
    %101 = vector.shape_cast %100 : vector<1x1x32xf32> to vector<1x32xf32>
    %102 = vector.broadcast %101 : vector<1x32xf32> to vector<16x32xf32>
    %103 = arith.addf %99, %102 : vector<16x32xf32>
    %c0_45 = arith.constant 0 : index
    %c0_46 = arith.constant 0 : index
    %c0_47 = arith.constant 0 : index
    %104 = vector.load %arg10[%c0_45, %c0_46, %c0_47] : memref<1x1x32xf32, #tpu.memory_space<vmem>>, vector<1x1x32xf32>
    %105 = vector.shape_cast %104 : vector<1x1x32xf32> to vector<1x32xf32>
    %c0_48 = arith.constant 0 : index
    %c0_49 = arith.constant 0 : index
    %c0_50 = arith.constant 0 : index
    %106 = vector.load %arg11[%c0_48, %c0_49, %c0_50] : memref<1x1x32xf32, #tpu.memory_space<vmem>>, vector<1x1x32xf32>
    %107 = vector.shape_cast %106 : vector<1x1x32xf32> to vector<1x32xf32>
    %cst_51 = arith.constant dense<0.000000e+00> : vector<16xf32>
    %108 = vector.multi_reduction <add>, %103, %cst_51 [1] : vector<16x32xf32> to vector<16xf32>
    %109 = vector.shape_cast %108 : vector<16xf32> to vector<16x1xf32>
    %cst_52 = arith.constant 3.200000e+01 : f32
    %110 = vector.broadcast %cst_52 : f32 to vector<16x1xf32>
    %111 = arith.divf %109, %110 : vector<16x1xf32>
    %112 = vector.broadcast %111 : vector<16x1xf32> to vector<16x32xf32>
    %113 = arith.subf %103, %112 : vector<16x32xf32>
    %114 = arith.mulf %113, %113 : vector<16x32xf32>
    %cst_53 = arith.constant dense<0.000000e+00> : vector<16xf32>
    %115 = vector.multi_reduction <add>, %114, %cst_53 [1] : vector<16x32xf32> to vector<16xf32>
    %116 = vector.shape_cast %115 : vector<16xf32> to vector<16x1xf32>
    %cst_54 = arith.constant 3.200000e+01 : f32
    %117 = vector.broadcast %cst_54 : f32 to vector<16x1xf32>
    %118 = arith.divf %116, %117 : vector<16x1xf32>
    %119 = vector.broadcast %111 : vector<16x1xf32> to vector<16x32xf32>
    %120 = arith.subf %103, %119 : vector<16x32xf32>
    %cst_55 = arith.constant 9.99999974E-6 : f32
    %121 = vector.broadcast %cst_55 : f32 to vector<16x1xf32>
    %122 = arith.addf %118, %121 : vector<16x1xf32>
    %123 = math.rsqrt %122 : vector<16x1xf32>
    %124 = vector.broadcast %123 : vector<16x1xf32> to vector<16x32xf32>
    %125 = arith.mulf %120, %124 : vector<16x32xf32>
    %126 = vector.broadcast %105 : vector<1x32xf32> to vector<16x32xf32>
    %127 = arith.mulf %125, %126 : vector<16x32xf32>
    %128 = vector.broadcast %107 : vector<1x32xf32> to vector<16x32xf32>
    %129 = arith.addf %127, %128 : vector<16x32xf32>
    %c0_56 = arith.constant 0 : index
    %c0_57 = arith.constant 0 : index
    %c0_58 = arith.constant 0 : index
    %130 = vector.load %arg12[%c0_56, %c0_57, %c0_58] : memref<1x32x64xf32, #tpu.memory_space<vmem>>, vector<1x32x64xf32>
    %131 = vector.shape_cast %130 : vector<1x32x64xf32> to vector<32x64xf32>
    %cst_59 = arith.constant dense<0.000000e+00> : vector<16x64xf32>
    %132 = tpu.matmul %129, %131, %cst_59 {dimension_numbers = #tpu.dot_dimension_numbers<[1], [0], [0], [1], [0, 0, 1, 1], [], []>} : vector<16x32xf32>, vector<32x64xf32>, vector<16x64xf32> -> vector<16x64xf32>
    %c0_60 = arith.constant 0 : index
    %c0_61 = arith.constant 0 : index
    %c0_62 = arith.constant 0 : index
    %133 = vector.load %arg13[%c0_60, %c0_61, %c0_62] : memref<1x1x64xf32, #tpu.memory_space<vmem>>, vector<1x1x64xf32>
    %134 = vector.shape_cast %133 : vector<1x1x64xf32> to vector<1x64xf32>
    %135 = vector.broadcast %134 : vector<1x64xf32> to vector<16x64xf32>
    %136 = arith.addf %132, %135 : vector<16x64xf32>
    %cst_63 = arith.constant 1.702000e+00 : f32
    %137 = vector.broadcast %cst_63 : f32 to vector<16x64xf32>
    %138 = arith.mulf %137, %136 : vector<16x64xf32>
    %139 = arith.negf %138 : vector<16x64xf32>
    %140 = math.exp %139 : vector<16x64xf32>
    %cst_64 = arith.constant 1.000000e+00 : f32
    %141 = vector.broadcast %cst_64 : f32 to vector<16x64xf32>
    %142 = arith.addf %141, %140 : vector<16x64xf32>
    %143 = arith.divf %141, %142 : vector<16x64xf32>
    %144 = arith.mulf %136, %143 : vector<16x64xf32>
    %c0_65 = arith.constant 0 : index
    %c0_66 = arith.constant 0 : index
    %c0_67 = arith.constant 0 : index
    %145 = vector.load %arg14[%c0_65, %c0_66, %c0_67] : memref<1x64x32xf32, #tpu.memory_space<vmem>>, vector<1x64x32xf32>
    %146 = vector.shape_cast %145 : vector<1x64x32xf32> to vector<64x32xf32>
    %cst_68 = arith.constant dense<0.000000e+00> : vector<16x32xf32>
    %147 = tpu.matmul %144, %146, %cst_68 {dimension_numbers = #tpu.dot_dimension_numbers<[1], [0], [0], [1], [0, 0, 1, 1], [], []>} : vector<16x64xf32>, vector<64x32xf32>, vector<16x32xf32> -> vector<16x32xf32>
    %148 = arith.addf %103, %147 : vector<16x32xf32>
    %c0_69 = arith.constant 0 : index
    %c0_70 = arith.constant 0 : index
    %c0_71 = arith.constant 0 : index
    %149 = vector.load %arg15[%c0_69, %c0_70, %c0_71] : memref<1x1x32xf32, #tpu.memory_space<vmem>>, vector<1x1x32xf32>
    %150 = vector.shape_cast %149 : vector<1x1x32xf32> to vector<1x32xf32>
    %151 = vector.broadcast %150 : vector<1x32xf32> to vector<16x32xf32>
    %152 = arith.addf %148, %151 : vector<16x32xf32>
    %c0_72 = arith.constant 0 : index
    %c0_73 = arith.constant 0 : index
    %153 = vector.load %arg19[%c0_72, %c0_73] : memref<16x32xf32, #tpu.memory_space<vmem>>, vector<16x32xf32>
    tpu.vector_store %arg19[%c0_72, %c0_73], %152 {strides = array<i32>} : memref<16x32xf32, #tpu.memory_space<vmem>>, vector<16x32xf32>,
    %c1_i32 = arith.constant 1 : i32
    %154 = arith.cmpi eq, %arg1, %c1_i32 : i32
    %155 = arith.extui %154 : i1 to i32
    %c0_i32_74 = arith.constant 0 : i32
    %156 = arith.cmpi ne, %155, %c0_i32_74 : i32
    scf.if %156 {
      %c0_75 = arith.constant 0 : index
      %c0_76 = arith.constant 0 : index
      %157 = vector.load %arg16[%c0_75, %c0_76] : memref<1x32xf32, #tpu.memory_space<vmem>>, vector<1x32xf32>
      %c0_77 = arith.constant 0 : index
      %c0_78 = arith.constant 0 : index
      %158 = vector.load %arg17[%c0_77, %c0_78] : memref<1x32xf32, #tpu.memory_space<vmem>>, vector<1x32xf32>
      %cst_79 = arith.constant dense<0.000000e+00> : vector<16xf32>
      %159 = vector.multi_reduction <add>, %152, %cst_79 [1] : vector<16x32xf32> to vector<16xf32>
      %160 = vector.shape_cast %159 : vector<16xf32> to vector<16x1xf32>
      %cst_80 = arith.constant 3.200000e+01 : f32
      %161 = vector.broadcast %cst_80 : f32 to vector<16x1xf32>
      %162 = arith.divf %160, %161 : vector<16x1xf32>
      %163 = vector.broadcast %162 : vector<16x1xf32> to vector<16x32xf32>
      %164 = arith.subf %152, %163 : vector<16x32xf32>
      %165 = arith.mulf %164, %164 : vector<16x32xf32>
      %cst_81 = arith.constant dense<0.000000e+00> : vector<16xf32>
      %166 = vector.multi_reduction <add>, %165, %cst_81 [1] : vector<16x32xf32> to vector<16xf32>
      %167 = vector.shape_cast %166 : vector<16xf32> to vector<16x1xf32>
      %cst_82 = arith.constant 3.200000e+01 : f32
      %168 = vector.broadcast %cst_82 : f32 to vector<16x1xf32>
      %169 = arith.divf %167, %168 : vector<16x1xf32>
      %170 = vector.broadcast %162 : vector<16x1xf32> to vector<16x32xf32>
      %171 = arith.subf %152, %170 : vector<16x32xf32>
      %cst_83 = arith.constant 9.99999974E-6 : f32
      %172 = vector.broadcast %cst_83 : f32 to vector<16x1xf32>
      %173 = arith.addf %169, %172 : vector<16x1xf32>
      %174 = math.rsqrt %173 : vector<16x1xf32>
      %175 = vector.broadcast %174 : vector<16x1xf32> to vector<16x32xf32>
      %176 = arith.mulf %171, %175 : vector<16x32xf32>
      %177 = vector.broadcast %157 : vector<1x32xf32> to vector<16x32xf32>
      %178 = arith.mulf %176, %177 : vector<16x32xf32>
      %179 = vector.broadcast %158 : vector<1x32xf32> to vector<16x32xf32>
      %180 = arith.addf %178, %179 : vector<16x32xf32>
      %181 = vector.shape_cast %180 : vector<16x32xf32> to vector<2x8x32xf32>
      %c0_84 = arith.constant 0 : index
      %c0_85 = arith.constant 0 : index
      %c0_86 = arith.constant 0 : index
      %182 = vector.load %arg18[%c0_84, %c0_85, %c0_86] : memref<2x8x32xf32, #tpu.memory_space<vmem>>, vector<2x8x32xf32>
      tpu.vector_store %arg18[%c0_84, %c0_85, %c0_86], %181 {strides = array<i32>} : memref<2x8x32xf32, #tpu.memory_space<vmem>>, vector<2x8x32xf32>,
    } else {
    }
    return
  }
  func.func @transform_0(%arg0: i32, %arg1: i32) -> (i32, i32, i32) {
    %c0_i32 = arith.constant 0 : i32
    %c0_i32_0 = arith.constant 0 : i32
    %c0_i32_1 = arith.constant 0 : i32
    return %arg0, %c0_i32, %c0_i32_0 : i32, i32, i32
  }
  func.func @transform_1(%arg0: i32, %arg1: i32) -> (i32, i32, i32) {
    %c0_i32 = arith.constant 0 : i32
    %c0_i32_0 = arith.constant 0 : i32
    %c0_i32_1 = arith.constant 0 : i32
    return %arg0, %c0_i32, %c0_i32_0 : i32, i32, i32
  }
  func.func @transform_2(%arg0: i32, %arg1: i32) -> (i32, i32, i32) {
    %c0_i32 = arith.constant 0 : i32
    %c0_i32_0 = arith.constant 0 : i32
    %c0_i32_1 = arith.constant 0 : i32
    return %arg1, %c0_i32, %c0_i32_0 : i32, i32, i32
  }
  func.func @transform_3(%arg0: i32, %arg1: i32) -> (i32, i32, i32) {
    %c0_i32 = arith.constant 0 : i32
    %c0_i32_0 = arith.constant 0 : i32
    %c0_i32_1 = arith.constant 0 : i32
    return %arg1, %c0_i32, %c0_i32_0 : i32, i32, i32
  }
  func.func @transform_4(%arg0: i32, %arg1: i32) -> (i32, i32, i32) {
    %c0_i32 = arith.constant 0 : i32
    %c0_i32_0 = arith.constant 0 : i32
    %c0_i32_1 = arith.constant 0 : i32
    return %arg1, %c0_i32, %c0_i32_0 : i32, i32, i32
  }
  func.func @transform_5(%arg0: i32, %arg1: i32) -> (i32, i32, i32) {
    %c0_i32 = arith.constant 0 : i32
    %c0_i32_0 = arith.constant 0 : i32
    %c0_i32_1 = arith.constant 0 : i32
    return %arg1, %c0_i32, %c0_i32_0 : i32, i32, i32
  }
  func.func @transform_6(%arg0: i32, %arg1: i32) -> (i32, i32, i32) {
    %c0_i32 = arith.constant 0 : i32
    %c0_i32_0 = arith.constant 0 : i32
    %c0_i32_1 = arith.constant 0 : i32
    return %arg1, %c0_i32, %c0_i32_0 : i32, i32, i32
  }
  func.func @transform_7(%arg0: i32, %arg1: i32) -> (i32, i32, i32) {
    %c0_i32 = arith.constant 0 : i32
    %c0_i32_0 = arith.constant 0 : i32
    %c0_i32_1 = arith.constant 0 : i32
    return %arg1, %c0_i32, %c0_i32_0 : i32, i32, i32
  }
  func.func @transform_8(%arg0: i32, %arg1: i32) -> (i32, i32, i32) {
    %c0_i32 = arith.constant 0 : i32
    %c0_i32_0 = arith.constant 0 : i32
    %c0_i32_1 = arith.constant 0 : i32
    return %arg1, %c0_i32, %c0_i32_0 : i32, i32, i32
  }
  func.func @transform_9(%arg0: i32, %arg1: i32) -> (i32, i32, i32) {
    %c0_i32 = arith.constant 0 : i32
    %c0_i32_0 = arith.constant 0 : i32
    %c0_i32_1 = arith.constant 0 : i32
    return %arg1, %c0_i32, %c0_i32_0 : i32, i32, i32
  }
  func.func @transform_10(%arg0: i32, %arg1: i32) -> (i32, i32, i32) {
    %c0_i32 = arith.constant 0 : i32
    %c0_i32_0 = arith.constant 0 : i32
    %c0_i32_1 = arith.constant 0 : i32
    return %arg1, %c0_i32, %c0_i32_0 : i32, i32, i32
  }
  func.func @transform_11(%arg0: i32, %arg1: i32) -> (i32, i32, i32) {
    %c0_i32 = arith.constant 0 : i32
    %c0_i32_0 = arith.constant 0 : i32
    %c0_i32_1 = arith.constant 0 : i32
    return %arg1, %c0_i32, %c0_i32_0 : i32, i32, i32
  }
  func.func @transform_12(%arg0: i32, %arg1: i32) -> (i32, i32, i32) {
    %c0_i32 = arith.constant 0 : i32
    %c0_i32_0 = arith.constant 0 : i32
    %c0_i32_1 = arith.constant 0 : i32
    return %arg1, %c0_i32, %c0_i32_0 : i32, i32, i32
  }
  func.func @transform_13(%arg0: i32, %arg1: i32) -> (i32, i32, i32) {
    %c0_i32 = arith.constant 0 : i32
    %c0_i32_0 = arith.constant 0 : i32
    %c0_i32_1 = arith.constant 0 : i32
    return %arg1, %c0_i32, %c0_i32_0 : i32, i32, i32
  }
  func.func @transform_14(%arg0: i32, %arg1: i32) -> (i32, i32) {
    %c0_i32 = arith.constant 0 : i32
    %c0_i32_0 = arith.constant 0 : i32
    %c0_i32_1 = arith.constant 0 : i32
    return %c0_i32, %c0_i32_0 : i32, i32
  }
  func.func @transform_15(%arg0: i32, %arg1: i32) -> (i32, i32) {
    %c0_i32 = arith.constant 0 : i32
    %c0_i32_0 = arith.constant 0 : i32
    %c0_i32_1 = arith.constant 0 : i32
    return %c0_i32, %c0_i32_0 : i32, i32
  }
  func.func @transform_16(%arg0: i32, %arg1: i32) -> (i32, i32, i32) {
    %c0_i32 = arith.constant 0 : i32
    %c0_i32_0 = arith.constant 0 : i32
    %c0_i32_1 = arith.constant 0 : i32
    return %arg0, %c0_i32, %c0_i32_0 : i32, i32, i32
  }
}

</mosaic_0001>

<bundles_post_ra>
// kernel: tpu_custom_call.1
= control target key start
LH: loop header
LB: loop body
LE: loop exit
PB: predicated region body
PF: predicated region fallthrough
CT: control target
= control target key end

     0   :  { %s3045_s0 = inlined_call_operand.hbm [shape: f32[2,8,32], index: 0, kind: input, shape index: {}]   ;;  %s3046_s1 = inlined_call_operand.vmem [shape: f32[2,1,8], index: 1, kind: input, shape index: {}]   ;;  %s3047_s2 = inlined_call_operand.vmem [shape: f32[2,1,32], index: 2, kind: input, shape index: {}]   ;;  %s3048_s3 = inlined_call_operand.vmem [shape: f32[2,1,32], index: 3, kind: input, shape index: {}]   ;;  %s3049_s4 = inlined_call_operand.vmem [shape: f32[2,32,96], index: 4, kind: input, shape index: {}]   ;;  %s3050_s5 = inlined_call_operand.vmem [shape: f32[2,1,96], index: 5, kind: input, shape index: {}]   ;;  %s3051_s6 = inlined_call_operand.vmem [shape: f32[2,32,32], index: 6, kind: input, shape index: {}]   ;;  %s3052_s7 = inlined_call_operand.vmem [shape: f32[2,1,32], index: 7, kind: input, shape index: {}]   ;;  %s3053_s8 = inlined_call_operand.vmem [shape: f32[2,1,32], index: 8, kind: input, shape index: {}]   ;;  %s3054_s9 = inlined_call_operand.vmem [shape: f32[2,1,32], index: 9, kind: input, shape index: {}]   ;;  %s3055_s10 = inlined_call_operand.vmem [shape: f32[2,32,64], index: 10, kind: input, shape index: {}]   ;;  %s3056_s11 = inlined_call_operand.vmem [shape: f32[2,1,64], index: 11, kind: input, shape index: {}]   ;;  %s3057_s12 = inlined_call_operand.vmem [shape: f32[2,64,32], index: 12, kind: input, shape index: {}]   ;;  %s3058_s13 = inlined_call_operand.vmem [shape: f32[2,1,32], index: 13, kind: input, shape index: {}]   ;;  %s3059_s14 = inlined_call_operand.vmem [shape: f32[1,32], index: 14, kind: input, shape index: {}]   ;;  %s3060_s15 = inlined_call_operand.vmem [shape: f32[1,32], index: 15, kind: input, shape index: {}]   ;;  %s3061_s16 = inlined_call_operand.hbm [shape: f32[2,8,32], index: 16, kind: output, shape index: {}]  }
   0x1   :  { %3072 = sst [smem:[#allocation14_spill]] %s3045_s0 }
   0x2   :  { %3073 = sst [smem:[#allocation15_spill]] %s3049_s4 }
   0x3   :  { %3074 = sst [smem:[#allocation16_spill]] %s3051_s6 }
   0x4   :  { %3075 = sst [smem:[#allocation17_spill]] %s3059_s14 }
   0x5   :  { %3076 = sst [smem:[#allocation18_spill]] %s3060_s15 }
   0x6   :  { %3077 = sst [smem:[#allocation19_spill]] %s3061_s16 }
   0x7   :  { %21 = vsyncpa [#allocation5], 0 }
   0x8   :  { %22 = vsyncpa [#allocation6], 0  ;;  %s2696_s21 = smov 0   ;;  %s2698_s22 = smov 0  }
   0x9   :  { %s2700_s23 = smov 0  }
   0xa LB: > { %3078 = sst [smem:[#allocation10_spill]] %s2591_s22  ;;  %s3063_s24 = sadd.s32 4294967295, %s2595_s23   ;;  %s2595_s23 = sphi %s2700_s23, %s28_s23   ;;  %s2591_s22 = sphi %s2698_s22, %s3103_s22   ;;  %s2587_s21 = sphi %s2696_s21, %s3102_s21  }
   0xb   : > { %3079 = sst [smem:[#allocation11_spill]] %s2595_s23  ;;  %s37_s25 = sadd.s32 1, %s2591_s22 }
   0xc   : > { %p38_p0 = scmp.ge.s32.totalorder %s37_s25, 2  ;;  %p2187_p1 = scmp.ge.s32.totalorder %s2595_s23, 1 }
   0xd   : > { %p477_p2 = scmp.lt.s32.totalorder %s2595_s23, 3  ;;  %p2723_p4 = scmp.eq.s32.totalorder %s3063_s24, 0 }
   0xe   : > { %s3105_s25 = smov (%p38_p0, %s37_s25), 0  ;;  %s2597_s28 = smov [#allocation4]  }
   0xf   : > { %3080 = sst [smem:[#allocation12_spill]] %s3105_s25  ;;  %p2717_p3 = pnand %p2187_p1, %p477_p2 }
  0x10   : > { %s3082_s27 = scalar_select %p2723_p4, 1, 0 }
  0x11   : > { %s3081_s26 = scalar_select %p2717_p3, 1, 0 }
  0x12   : > { %p2429_p5 = pneg %p2717_p3  ;;  %s492_s29 = sshll.u32 %s2597_s28, 4  ;;  %s493_s29 = int_to_ptr.vmem [resolvable:$true] %s492_s29 }
  0x13   : > { %s3084_s18 = sld [smem:[#allocation14_spill]] }
  0x14   : > { %p2731_p6 = pnand %p2723_p4, %p2429_p5 }
  0x16   : > { %p2513_p8 = pneg %p2731_p6 }
  0x19   : > { %s2511_s19 = scalar_lea.hbm %s3084_s18, 256 }
  0x1a   : > { %p2512_p7 = scmp.ne.s32.totalorder %s3084_s18, %s2511_s19  ;;  %p2518_p11 = scmp.lt.u32.totalorder %s2511_s19, %s3084_s18 }
  0x1c   : > { %p2514_p9 = pnand %p2513_p8, %p2512_p7 }
  0x1e   : > { %p2515_p10 = pneg %p2514_p9 }
  0x20   : > { %p2520_p12 = pnand %p2518_p11, %p2515_p10 }
  0x22   : > { %2523 = shalt.err (!%p2520_p12)
}
  0x23   : > { %s2524_s22 = scalar_lea.vmem %s493_s29, 256  ;;  %p2532_p2 = scmp.lt.s32.totalorder %s493_s29, %s493_s29 }
  0x24   : > { %p2525_p13 = scmp.ne.s32.totalorder %s493_s29, %s2524_s22  ;;  %p2533_p5 = scmp.lt.s32.totalorder %s2524_s22, %s2524_s22 }
  0x26   : > { %p2527_p0 = pnand %p2525_p13, %p2513_p8  ;;  %p2534_p4 = por %p2533_p5, %p2532_p2 }
  0x28   : > { %p2528_p1 = pneg %p2527_p0 }
  0x2a   : > { %p2535_p3 = pnand %p2534_p4, %p2528_p1 }
  0x2c   : > { %2538 = shalt.err (!%p2535_p3)
}
  0x2d   : > { %s2598_s24 = smov 128   ;;  %s2599_s0 = smov 8  }
  0x2e   : > { %2432 = dma.hbm_to_vmem [thread:$0]  (!%p2731_p6), %s3084_s18, 256, %s493_s29, [#allocation5], %s2598_s24, %s2598_s24, %s2599_s0  }
  0x2f   : > { %p3085_p7 = scmp.ne.s32.totalorder %s3081_s26, 0 }
  0x31   : > { %602 = sbr.rel (%p3085_p7) target bundleno = 3471 (0xd8f), region = 84 }
  0x38   : > { %p3086_p9 = scmp.ne.s32.totalorder %s3082_s27, 0 }
  0x3a   : > { %2578 = dma.done.wait (%p3086_p9), [#allocation5], 256  }
  0x3b   : > { %2580 = vsyncadd (%p3086_p9), [#allocation5], 4294967040  ;;  %p696_p3 = scmp.lt.s32.totalorder %s2587_s21, 1  ;;  %s3087_s4 = sld [smem:[#allocation15_spill]] }
  0x3c   : > { %s3088_s6 = sld [smem:[#allocation16_spill]]  ;;  %p2201_p4 = scmp.ne.s32.totalorder %s2587_s21, 0 }
  0x3d   : > { %s2759_s22 = scalar_select %p696_p3, %s2587_s21, 1 }
  0x3e   : > { %744 = sbr.rel (%p2201_p4) target bundleno = 69 (0x45), region = 92  ;;  %v745_v0 = vld [vmem:[#allocation4] sm:$0xff] (!%p2201_p4)  ;;  %vm747_vm0 = vcmask (!%p2201_p4), 261120   ;;  %v746_v1 = vld [vmem:[#allocation4 + $0x8] sm:$0xff] (!%p2201_p4) }
  0x3f   : > { %s2241_s28 = sshll.u32 %s2759_s22, 5  ;;  %s720_s14 = scalar_lea.vmem %s3053_s8, %s2759_s22  ;;  %748 = vst.msk [vmem:[#allocation2] sm:$0xff] (!%p2201_p4), %vm747_vm0, %v745_v0  ;;  %749 = vst.msk [vmem:[#allocation2 + $0x8] sm:$0xff] (!%p2201_p4), %vm747_vm0, %v746_v1 }
  0x40   : > { %s723_s17 = scalar_lea.vmem %s3054_s9, %s2759_s22  ;;  %s739_s24 = scalar_lea.vmem %s3058_s13, %s2759_s22 }
  0x41   : > { %s2777_s30 = scalar_lea.vmem %s3087_s4, %s2241_s28  ;;  %s2799_s4 = scalar_lea.vmem %s3055_s10, %s2241_s28 }
  0x42   : > { %s2782_s23 = scalar_lea.vmem %s3088_s6, %s2241_s28  ;;  %s731_s6 = scalar_lea.vmem %s3056_s11, %s2759_s22 }
  0x43   : > { %3089 = sst [smem:[#allocation13_spill]] %s2782_s23  ;;  %s2244_s23 = sshll.u32 %s2759_s22, 6 }
  0x44   : > { %s2809_s27 = scalar_lea.vmem %s3057_s12, %s2244_s23 }
  0x45 PF: > { %vm778_vm1 = vcmask 261120   ;;  %v822_v16 = vld [vmem:[%s2777_s30] sm:$0xff]  ;;  %v823_v17 = vld [vmem:[%s2777_s30 + $0x8] sm:$0xff]  ;;  %v824_v18 = vld [vmem:[%s2777_s30 + $0x10] sm:$0xff]  ;;  %s3090_s0 = scalar_lea.vmem %s3047_s2, %s2759_s22  ;;  %s3091_s25 = scalar_lea.vmem %s3048_s3, %s2759_s22  ;;  %v2600_v38 = vmov 0.0   ;;  %vm2601_vm2 = vmmov 0   ;;  %v752_v46 = vlaneseq }
  0x46   : > { %v2816_v2 = vld [vmem:[#allocation2] sm:$0xff]  ;;  %v2818_v3 = vld [vmem:[#allocation2 + $0x8] sm:$0xff]  ;;  %v2381_v19 = vpack.c.bf16 %v823_v17, %v822_v16  ;;  %v825_v20 = vld [vmem:[%s2777_s30 + $0x18] sm:$0xff]  ;;  %2310 = vmatprep.subr.mxu0 %v2600_v38  ;;  %2312 = vmatprep.mubr.msk.f32.mxu0 %vm2601_vm2, %v2600_v38  ;;  %s3092_s15 = scalar_lea.vmem %s3050_s5, %s2759_s22  ;;  %s2602_s26 = smov 96   ;;  %vm917_vm3 = vcmask 130048   ;;  %vm1069_vm5 = vcmask 64512  }
  0x47   : > { %v779_v4 = vsel %vm778_vm1, %v2816_v2, 0.0  ;;  %v782_v5 = vsel %vm778_vm1, %v2818_v3, 0.0  ;;  %v2385_v21 = vpack.c.bf16 %v825_v20, %v824_v18  ;;  %v2204_v29 = vld [vmem:[%s3090_s0] ss:$0 sm:$0xff]  ;;  %v753_v47 = vshrl.u32 %v752_v46, 7  ;;  %s2603_s0 = smov 64   ;;  %s3094_s19 = scalar_lea.vmem %s3052_s7, %s2759_s22 }
  0x48   : > { %780 = vadd.xlane.f32.xlu0 %v779_v4  ;;  %2382 = vmatprep.subr.bf16.mxu1 %v2381_v19  ;;  %v2205_v31 = vld [vmem:[%s3091_s25] ss:$0 sm:$0xff]  ;;  %v755_v48 = vand.u32 127, %v752_v46  ;;  %v2203_v52 = vld [vmem:[%s3046_s1 + $0x1] ss:$0 sm:$0xff]  ;;  %s2604_s30 = smov 80  }
  0x49   : > { %2384 = vmatpush3.bf16.msra.mxu1 %v2381_v19  ;;  %v2206_v39 = vld [vmem:[%s3092_s15] ss:$0 sm:$0xff]  ;;  %s2605_s20 = smov 112   ;;  %s2606_s25 = smov 48   ;;  %vm1584_vm6 = vcmask 261248   ;;  %vm1845_vm7 = vcmask 523264  }
  0x4a   : > { %2386 = vmatprep.subr.bf16.mxu1 %v2385_v21  ;;  %vm756_vm4 = vcmp.gt.s32.totalorder %v755_v48, %v753_v47  ;;  %v2202_v50 = vld [vmem:[%s3046_s1] ss:$0 sm:$0xff]  ;;  %s3093_s16 = sld [smem:[#allocation13_spill]]  ;;  %s2607_s18 = smov 16  }
  0x4b   : > { %v757_v49 = vsel %vm756_vm4, -3.4028235e+38, %v2600_v38  ;;  %p2234_p6 = scmp.ne.s32.totalorder %s2587_s21, 1 }
  0x4c   : > { %783 = vadd.xlane.f32.xlu0 %v782_v5  ;;  %v2877_v51 = vadd.f32 %v2202_v50, %v757_v49  ;;  %v2883_v54 = vadd.f32 %v2203_v52, %v757_v49 }
  0x4d   : > { %2388 = vmatpush3.bf16.msra.mxu1 %v2385_v21 }
  0x4e   : > { %2300 = vmatprep.subr.mxu1 %v2600_v38  ;;  %v774_v53 = vmax.f32 %v2877_v51, -3.4028235e+38  ;;  %v775_v58 = vmax.f32 %v2883_v54, -3.4028235e+38 }
  0xd5   : > { %v781_v6 = vpop.xlane.xlu0 %780 }
  0xd6   : > { %v786_v7 = vmul.f32 0.03125, %v781_v6 }
  0xd8   : > { %v788_v8 = vsub.f32 %v2816_v2, %v786_v7 }
  0xd9   : > { %v784_v9 = vpop.xlane.xlu0 %783 }
  0xda   : > { %v787_v10 = vmul.f32 0.03125, %v784_v9  ;;  %v790_v11 = vmul.f32 %v788_v8, %v788_v8 }
  0xdc   : > { %v789_v12 = vsub.f32 %v2818_v3, %v787_v10  ;;  %v792_v13 = vsel %vm778_vm1, %v790_v11, 0.0 }
  0xdd   : > { %793 = vadd.xlane.f32.xlu1 %v792_v13 }
  0xde   : > { %v791_v14 = vmul.f32 %v789_v12, %v789_v12 }
  0xe0   : > { %v795_v15 = vsel %vm778_vm1, %v791_v14, 0.0 }
  0xe1   : > { %796 = vadd.xlane.f32.xlu1 %v795_v15 }
 0x16a   : > { %v794_v22 = vpop.xlane.xlu1 %793 }
 0x16b   : > { %v798_v23 = vmul.f32 0.03125, %v794_v22 }
 0x16d   : > { %v800_v24 = vadd.f32 1e-05, %v798_v23 }
 0x16e   : > { %v797_v25 = vpop.xlane.xlu1 %796 }
 0x16f   : > { %2475 = vrsqrt.f32 %v800_v24  ;;  %v799_v26 = vmul.f32 0.03125, %v797_v25 }
 0x171   : > { %v801_v27 = vadd.f32 1e-05, %v799_v26 }
 0x173   : > { %2477 = vrsqrt.f32 %v801_v27 }
 0x179   : > { %v2476_v28 = vpop.eup %2475 }
 0x17a   : > { %v804_v30 = vmul.f32 %v2476_v28, %v788_v8 }
 0x17c   : > { %v812_v32 = vmul.f32 %v2204_v29, %v804_v30 }
 0x17d   : > { %v2478_v33 = vpop.eup %2477 }
 0x17e   : > { %v805_v34 = vmul.f32 %v2478_v33, %v789_v12  ;;  %v820_v35 = vadd.f32 %v2205_v31, %v812_v32 }
 0x180   : > { %v813_v36 = vmul.f32 %v2204_v29, %v805_v34  ;;  %2297 = vmatprep.mubr.msk.f32.mxu1 %vm778_vm1, %v820_v35 }
 0x182   : > { %v821_v37 = vadd.f32 %v2205_v31, %v813_v36 }
 0x184   : > { %2298 = vmatmul.mubr.msk.f32.vlgmr.msra.gmra.mrb[0].mxu1 %vm778_vm1, %v821_v37 }
 0x185   : > { %2302 = vmatprep.mubr.msk.f32.mxu1 %vm2601_vm2, %v2600_v38 }
 0x257   : > { %v2299_v40 = vpop.f32.mrb[0].mxu1 }
 0x258   : > { %v2855_v41 = vadd.f32 %v2299_v40, %v2206_v39  ;;  %v905_v42 = vpop.f32.mrb[1].mxu1 }
 0x259   : > { %v2857_v43 = vadd.f32 %v2206_v39, %v905_v42 }
 0x25a   : > { %993 = vrot.lane.b32.xlu1 %v2855_v41, %s2602_s26 }
 0x25b   : > { %915 = vrot.lane.b32.xlu0 %v2857_v43, %s2602_s26 }
 0x2cc   : > { %v994_v45 = vpop.permute.xlu1 %993 }
 0x2cd   : > { %v916_v44 = vpop.permute.xlu0 %915 }
 0x2ce   : > { %2301 = vmatpush3.xpose.msk.msra.mxu1 %vm917_vm3, %v916_v44 }
 0x2cf   : > { %2305 = vmatprep.subr.mxu1 %v2600_v38 }
 0x2d1   : > { %2303 = vmatmul.mubr.msk.f32.vlgmr.msra.gmra.mrb[2].mxu1 %vm917_vm3, %v2857_v43 }
 0x2d2   : > { %2306 = vmatpush3.xpose.msk.msra.mxu1 %vm917_vm3, %v994_v45  ;;  %2307 = vmatprep.mubr.msk.f32.mxu1 %vm2601_vm2, %v2600_v38 }
 0x2d3   : > { %2315 = vmatprep.subr.mxu1 %v2600_v38 }
 0x2d5   : > { %2308 = vmatmul.mubr.msk.f32.vlgmr.msra.gmra.mrb[4].mxu1 %vm917_vm3, %v2855_v41 }
 0x2d6   : > { %2317 = vmatprep.mubr.msk.f32.mxu1 %vm2601_vm2, %v2600_v38 }
 0x3a4   : > { %v988_v55 = vpop.f32.mrb[2].mxu1 }
 0x3a5   : > { %v989_v56 = vadd.f32 %v988_v55, %v774_v53  ;;  %v2304_v57 = vpop.f32.mrb[3].mxu1  ;;  %v1589_v55 = vld [vmem:[%s3093_s16] sm:$0xff] }
 0x3a7   : > { %v1070_v59 = vsel %vm1069_vm5, %v989_v56, -inf }
 0x3a8   : > { %1071 = vmax.xlane.f32.xlu1 %v1070_v59  ;;  %v1065_v60 = vpop.f32.mrb[4].mxu1 }
 0x3a9   : > { %v1066_v61 = vadd.f32 %v1065_v60, %v775_v58  ;;  %v2309_v62 = vpop.f32.mrb[5].mxu1 }
 0x3ab   : > { %v1073_v63 = vsel %vm1069_vm5, %v1066_v61, -inf }
 0x3ac   : > { %1074 = vmax.xlane.f32.xlu0 %v1073_v63 }
 0x3b9   : > { %1168 = vrot.lane.b32.xlu1 %v2855_v41, %s2603_s0 }
 0x3bd   : > { %1248 = vrot.lane.b32.xlu1 %v2857_v43, %s2604_s30 }
 0x3c1   : > { %1326 = vrot.lane.b32.xlu1 %v2855_v41, %s2604_s30 }
 0x3c2   : > { %1092 = vrot.lane.b32.xlu0 %v2857_v43, %s2603_s0 }
 0x435   : > { %v1072_v0 = vpop.xlane.xlu1 %1071 }
 0x436   : > { %v1076_v1 = vsub.f32 %v989_v56, %v1072_v0  ;;  %v1590_v56 = vld [vmem:[%s3093_s16 + $0x8] sm:$0xff] }
 0x437   : > { %v2389_v57 = vpack.c.bf16 %v1590_v56, %v1589_v55  ;;  %v1843_v55 = vld [vmem:[%s2809_s27 + $0x30] sm:$0xff]  ;;  %v1844_v56 = vld [vmem:[%s2809_s27 + $0x38] sm:$0xff] }
 0x438   : > { %v1078_v4 = vmul.f32 1.442695, %v1076_v1 }
 0x439   : > { %v1169_v5 = vpop.permute.xlu1 %1168  ;;  %v1075_v6 = vpop.xlane.xlu0 %1074 }
 0x43a   : > { %2479 = vpow2.f32 %v1078_v4  ;;  %v1077_v7 = vsub.f32 %v1066_v61, %v1075_v6  ;;  %2316 = vmatpush3.msra.mxu1 %v1169_v5 }
 0x43b   : > { %2325 = vmatprep.subr.mxu1 %v2600_v38 }
 0x43c   : > { %v1080_v8 = vmul.f32 1.442695, %v1077_v7  ;;  %v2223_v7 = vld [vmem:[%s3094_s19] ss:$0 sm:$0xff] }
 0x43d   : > { %v1093_v9 = vpop.permute.xlu0 %1092  ;;  %v1249_v14 = vpop.permute.xlu1 %1248 }
 0x43e   : > { %2481 = vpow2.f32 %v1080_v8  ;;  %2311 = vmatpush3.msra.mxu0 %v1093_v9 }
 0x43f   : > { %2320 = vmatprep.subr.mxu0 %v2600_v38 }
 0x441   : > { %v1327_v15 = vpop.permute.xlu1 %1326 }
 0x444   : > { %v2480_v10 = vpop.eup %2479 }
 0x445   : > { %v1082_v11 = vsel %vm1069_vm5, %v2480_v10, 0.0 }
 0x446   : > { %1083 = vadd.xlane.f32.xlu0 %v1082_v11 }
 0x448   : > { %v2482_v12 = vpop.eup %2481 }
 0x449   : > { %v1085_v13 = vsel %vm1069_vm5, %v2482_v12, 0.0 }
 0x44a   : > { %1086 = vadd.xlane.f32.xlu1 %v1085_v13 }
 0x45b   : > { %1324 = vrot.lane.b32.xlu1 %v2855_v41, %s2605_s20 }
 0x45c   : > { %1246 = vrot.lane.b32.xlu0 %v2857_v43, %s2605_s20  ;;  %s3096_s20 = sld [smem:[#allocation18_spill]] (!%p2234_p6) }
 0x4d3   : > { %v1084_v16 = vpop.xlane.xlu0 %1083 }
 0x4d4   : > { %2483 = vrcp.f32 %v1084_v16 }
 0x4d7   : > { %v1087_v17 = vpop.xlane.xlu1 %1086  ;;  %v1247_v22 = vpop.permute.xlu0 %1246 }
 0x4d8   : > { %2485 = vrcp.f32 %v1087_v17 }
 0x4db   : > { %v1325_v23 = vpop.permute.xlu1 %1324 }
 0x4de   : > { %v2484_v18 = vpop.eup %2483 }
 0x4df   : > { %v1090_v19 = vmul.f32 %v2484_v18, %v2480_v10 }
 0x4e1   : > { %2313 = vmatmul.mubr.msk.f32.vlgmr.msra.gmra.mrb[0].mxu0 %vm1069_vm5, %v1090_v19 }
 0x4e2   : > { %v2486_v20 = vpop.eup %2485  ;;  %2321 = vmatpush3.xpose.msk.msra.mxu0 %vm917_vm3, %v1249_v14  ;;  %2322 = vmatprep.mubr.msk.f32.mxu0 %vm2601_vm2, %v2600_v38 }
 0x4e3   : > { %v1091_v21 = vmul.f32 %v2486_v20, %v2482_v12  ;;  %2330 = vmatprep.subr.mxu0 %v2600_v38 }
 0x4e5   : > { %2318 = vmatmul.mubr.msk.f32.vlgmr.msra.gmra.mrb[6].mxu1 %vm1069_vm5, %v1091_v21  ;;  %2323 = vmatmul.mubr.msk.f32.vlgmr.msra.gmra.mrb[2].mxu0 %vm917_vm3, %v1247_v22 }
 0x4e6   : > { %2326 = vmatpush3.xpose.msk.msra.mxu1 %vm917_vm3, %v1327_v15  ;;  %2327 = vmatprep.mubr.msk.f32.mxu1 %vm2601_vm2, %v2600_v38 }
 0x4e7   : > { %2335 = vmatprep.subr.mxu1 %v2600_v38  ;;  %2332 = vmatprep.mubr.msk.f32.mxu0 %vm2601_vm2, %v2600_v38 }
 0x4e9   : > { %2328 = vmatmul.mubr.msk.f32.vlgmr.msra.gmra.mrb[8].mxu1 %vm917_vm3, %v1325_v23  ;;  %v1729_v23 = vld [vmem:[%s2799_s4] sm:$0xff] }
 0x4ea   : > { %2337 = vmatprep.mubr.msk.f32.mxu1 %vm2601_vm2, %v2600_v38 }
 0x5b4   : > { %v1164_v24 = vpop.f32.mrb[0].mxu0 }
 0x5b5   : > { %1244 = vst.msk [vmem:[#allocation3] sm:$0xff] %vm917_vm3, %v1164_v24  ;;  %v2314_v25 = vpop.f32.mrb[1].mxu0  ;;  %v1730_v24 = vld [vmem:[%s2799_s4 + $0x8] sm:$0xff] }
 0x5b6   : > { %v2397_v25 = vpack.c.bf16 %v1730_v24, %v1729_v23 }
 0x5b8   : > { %v1240_v26 = vpop.f32.mrb[6].mxu1  ;;  %v1320_v27 = vpop.f32.mrb[2].mxu0 }
 0x5b9   : > { %1245 = vst.msk [vmem:[#allocation3 + $0x8] sm:$0xff] %vm917_vm3, %v1240_v26  ;;  %v1321_v28 = vadd.f32 %v1320_v27, %v774_v53  ;;  %v2319_v29 = vpop.f32.mrb[7].mxu1  ;;  %v2324_v30 = vpop.f32.mrb[3].mxu0  ;;  %v1731_v26 = vld [vmem:[%s2799_s4 + $0x10] sm:$0xff]  ;;  %v1732_v27 = vld [vmem:[%s2799_s4 + $0x18] sm:$0xff] }
 0x5bb   : > { %v1402_v31 = vsel %vm1069_vm5, %v1321_v28, -inf }
 0x5bc   : > { %1403 = vmax.xlane.f32.xlu0 %v1402_v31  ;;  %v1398_v32 = vpop.f32.mrb[8].mxu1 }
 0x5bd   : > { %v1399_v33 = vadd.f32 %v1398_v32, %v775_v58  ;;  %v2329_v34 = vpop.f32.mrb[9].mxu1  ;;  %v1592_v58 = vld [vmem:[%s3093_s16 + $0x18] sm:$0xff] }
 0x5bf   : > { %v1405_v35 = vsel %vm1069_vm5, %v1399_v33, -inf }
 0x5c0   : > { %1406 = vmax.xlane.f32.xlu1 %v1405_v35 }
 0x5d1   : > { %1500 = vrot.lane.b32.xlu1 %v2855_v41, %s2606_s25 }
 0x649   : > { %v1404_v36 = vpop.xlane.xlu0 %1403 }
 0x64a   : > { %v1408_v37 = vsub.f32 %v1321_v28, %v1404_v36  ;;  %v2401_v28 = vpack.c.bf16 %v1732_v27, %v1731_v26  ;;  %v2224_v36 = vld [vmem:[%s720_s14] ss:$0 sm:$0xff] }
 0x64c   : > { %v1410_v38 = vmul.f32 1.442695, %v1408_v37 }
 0x64d   : > { %v1407_v39 = vpop.xlane.xlu1 %1406 }
 0x64e   : > { %2487 = vpow2.f32 %v1410_v38  ;;  %v1409_v40 = vsub.f32 %v1399_v33, %v1407_v39  ;;  %v2225_v38 = vld [vmem:[%s723_s17] ss:$0 sm:$0xff] }
 0x650   : > { %v1412_v42 = vmul.f32 1.442695, %v1409_v40 }
 0x651   : > { %v1501_v44 = vpop.permute.xlu1 %1500 }
 0x652   : > { %2489 = vpow2.f32 %v1412_v42  ;;  %2336 = vmatpush3.msra.mxu1 %v1501_v44 }
 0x653   : > { %2398 = vmatprep.subr.bf16.mxu1 %v2397_v25 }
 0x658   : > { %v2488_v45 = vpop.eup %2487 }
 0x659   : > { %v1414_v46 = vsel %vm1069_vm5, %v2488_v45, 0.0 }
 0x65a   : > { %1415 = vadd.xlane.f32.xlu0 %v1414_v46 }
 0x65c   : > { %v2490_v47 = vpop.eup %2489 }
 0x65d   : > { %v1417_v48 = vsel %vm1069_vm5, %v2490_v47, 0.0 }
 0x65e   : > { %1418 = vadd.xlane.f32.xlu0 %v1417_v48  ;;  %v1838_v48 = vld [vmem:[%s2809_s27 + $0x8] sm:$0xff] }
 0x674   : > { %1424 = vrot.lane.b32.xlu0 %v2857_v43, %s2606_s25  ;;  %v1591_v43 = vld [vmem:[%s3093_s16 + $0x10] sm:$0xff] }
 0x675   : > { %v2393_v59 = vpack.c.bf16 %v1592_v58, %v1591_v43  ;;  %v2226_v43 = vld [vmem:[%s731_s6] ss:$0 sm:$0xff] }
 0x6e7   : > { %v1416_v41 = vpop.xlane.xlu0 %1415 }
 0x6e8   : > { %2491 = vrcp.f32 %v1416_v41 }
 0x6eb   : > { %v1419_v49 = vpop.xlane.xlu0 %1418 }
 0x6ec   : > { %2493 = vrcp.f32 %v1419_v49  ;;  %v1839_v49 = vld [vmem:[%s2809_s27 + $0x10] sm:$0xff] }
 0x6ef   : > { %v1425_v50 = vpop.permute.xlu0 %1424 }
 0x6f0   : > { %2331 = vmatpush3.msra.mxu0 %v1425_v50  ;;  %v1840_v50 = vld [vmem:[%s2809_s27 + $0x18] sm:$0xff] }
 0x6f1   : > { %2390 = vmatprep.subr.bf16.mxu0 %v2389_v57 }
 0x6f2   : > { %v2492_v51 = vpop.eup %2491 }
 0x6f3   : > { %v1422_v52 = vmul.f32 %v2492_v51, %v2488_v45  ;;  %v2409_v51 = vpack.c.bf16 %v1840_v50, %v1839_v49 }
 0x6f5   : > { %2333 = vmatmul.mubr.msk.f32.vlgmr.msra.gmra.mrb[4].mxu0 %vm1069_vm5, %v1422_v52  ;;  %v1841_v52 = vld [vmem:[%s2809_s27 + $0x20] sm:$0xff] }
 0x6f6   : > { %v2494_v53 = vpop.eup %2493  ;;  %2392 = vmatpush3.bf16.msra.mxu0 %v2389_v57  ;;  %v2417_v57 = vpack.c.bf16 %v1844_v56, %v1843_v55 }
 0x6f7   : > { %v1423_v54 = vmul.f32 %v2494_v53, %v2490_v47  ;;  %2394 = vmatprep.subr.bf16.mxu0 %v2393_v59  ;;  %v1837_v47 = vld [vmem:[%s2809_s27] sm:$0xff]  ;;  %v1842_v53 = vld [vmem:[%s2809_s27 + $0x28] sm:$0xff] }
 0x6f8   : > { %v2405_v41 = vpack.c.bf16 %v1838_v48, %v1837_v47 }
 0x6f9   : > { %2338 = vmatmul.mubr.msk.f32.vlgmr.msra.gmra.mrb[10].mxu1 %vm1069_vm5, %v1423_v54  ;;  %v2413_v54 = vpack.c.bf16 %v1842_v53, %v1841_v52 }
 0x6fa   : > { %2396 = vmatpush3.bf16.msra.mxu0 %v2393_v59  ;;  %2400 = vmatpush3.bf16.msra.mxu1 %v2397_v25 }
 0x6fb   : > { %2402 = vmatprep.subr.bf16.mxu1 %v2401_v28  ;;  %2406 = vmatprep.subr.bf16.mxu0 %v2405_v41 }
 0x6fe   : > { %2404 = vmatpush3.bf16.msra.mxu1 %v2401_v28 }
 0x7c8   : > { %v1496_v60 = vpop.f32.mrb[4].mxu0 }
 0x7c9   : > { %1578 = vrot.lane.b32.xlu1 %v1496_v60, %s2607_s18  ;;  %v2334_v61 = vpop.f32.mrb[5].mxu0 }
 0x7cc   : > { %v1572_v62 = vpop.f32.mrb[10].mxu1 }
 0x7cd   : > { %1580 = vrot.lane.b32.xlu1 %v1572_v62, %s2607_s18  ;;  %v2339_v63 = vpop.f32.mrb[11].mxu1 }
 0x83b   : > { %v1579_v0 = vpop.permute.xlu1 %1578 }
 0x83c   : > { %1585 = vst.msk [vmem:[#allocation3] sm:$0xff] %vm1584_vm6, %v1579_v0 }
 0x83f   : > { %v1581_v1 = vpop.permute.xlu1 %1580 }
 0x840   : > { %1586 = vst.msk [vmem:[#allocation3 + $0x8] sm:$0xff] %vm1584_vm6, %v1581_v1 }
 0x843   : > { %v1587_v4 = vld [vmem:[#allocation3] sm:$0xff] }
 0x844   : > { %2348 = vmatprep.mubr.msk.f32.mxu0 %vm778_vm1, %v1587_v4 }
 0x847   : > { %v1588_v5 = vld [vmem:[#allocation3 + $0x8] sm:$0xff] }
 0x848   : > { %2349 = vmatmul.mubr.msk.f32.vlgmr.msra.gmra.mrb[6].mxu0 %vm778_vm1, %v1588_v5 }
 0x849   : > { %2408 = vmatpush3.bf16.msra.mxu0 %v2405_v41 }
 0x84a   : > { %2410 = vmatprep.subr.bf16.mxu0 %v2409_v51 }
 0x84d   : > { %2412 = vmatpush3.bf16.msra.mxu0 %v2409_v51 }
 0x84e   : > { %2414 = vmatprep.subr.bf16.mxu0 %v2413_v54 }
 0x851   : > { %2416 = vmatpush3.bf16.msra.mxu0 %v2413_v54 }
 0x852   : > { %2418 = vmatprep.subr.bf16.mxu0 %v2417_v57 }
 0x855   : > { %2420 = vmatpush3.bf16.msra.mxu0 %v2417_v57 }
 0x91b   : > { %v2350_v6 = vpop.f32.mrb[6].mxu0 }
 0x91c   : > { %v1675_v8 = vadd.f32 %v2350_v6, %v2818_v3  ;;  %v1665_v9 = vpop.f32.mrb[7].mxu0 }
 0x91d   : > { %v1674_v10 = vadd.f32 %v1665_v9, %v2816_v2 }
 0x91e   : > { %v2945_v11 = vadd.f32 %v2223_v7, %v1675_v8 }
 0x91f   : > { %v2947_v12 = vadd.f32 %v2223_v7, %v1674_v10 }
 0x920   : > { %v1690_v13 = vsel %vm778_vm1, %v2945_v11, 0.0 }
 0x921   : > { %1691 = vadd.xlane.f32.xlu1 %v1690_v13  ;;  %v1687_v14 = vsel %vm778_vm1, %v2947_v12, 0.0 }
 0x922   : > { %1688 = vadd.xlane.f32.xlu0 %v1687_v14 }
 0x9ae   : > { %v1692_v15 = vpop.xlane.xlu1 %1691 }
 0x9af   : > { %v1694_v16 = vmul.f32 0.03125, %v1692_v15  ;;  %v1689_v3 = vpop.xlane.xlu0 %1688  ;;  %v2233_v15 = vld [vmem:[%s739_s24] ss:$0 sm:$0xff]  ;;  %s3095_s24 = sld [smem:[#allocation17_spill]] (!%p2234_p6) }
 0x9b0   : > { %v1693_v2 = vmul.f32 0.03125, %v1689_v3 }
 0x9b1   : > { %v1696_v17 = vsub.f32 %v2945_v11, %v1694_v16 }
 0x9b2   : > { %v1695_v18 = vsub.f32 %v2947_v12, %v1693_v2 }
 0x9b3   : > { %v1698_v21 = vmul.f32 %v1696_v17, %v1696_v17 }
 0x9b4   : > { %v1697_v19 = vmul.f32 %v1695_v18, %v1695_v18 }
 0x9b5   : > { %v1702_v22 = vsel %vm778_vm1, %v1698_v21, 0.0 }
 0x9b6   : > { %v1699_v20 = vsel %vm778_vm1, %v1697_v19, 0.0 }
 0x9b7   : > { %1700 = vadd.xlane.f32.xlu0 %v1699_v20 }
 0x9bb   : > { %1703 = vadd.xlane.f32.xlu0 %v1702_v22 }
 0xa44   : > { %v1701_v29 = vpop.xlane.xlu0 %1700 }
 0xa45   : > { %v1705_v30 = vmul.f32 0.03125, %v1701_v29 }
 0xa47   : > { %v1707_v31 = vadd.f32 1e-05, %v1705_v30 }
 0xa48   : > { %v1704_v32 = vpop.xlane.xlu0 %1703 }
 0xa49   : > { %2495 = vrsqrt.f32 %v1707_v31  ;;  %v1706_v33 = vmul.f32 0.03125, %v1704_v32 }
 0xa4b   : > { %v1708_v34 = vadd.f32 1e-05, %v1706_v33 }
 0xa4d   : > { %2497 = vrsqrt.f32 %v1708_v34 }
 0xa53   : > { %v2496_v35 = vpop.eup %2495 }
 0xa54   : > { %v1711_v37 = vmul.f32 %v2496_v35, %v1695_v18 }
 0xa56   : > { %v1719_v39 = vmul.f32 %v2224_v36, %v1711_v37 }
 0xa57   : > { %v2498_v40 = vpop.eup %2497 }
 0xa58   : > { %v1712_v42 = vmul.f32 %v2498_v40, %v1696_v17  ;;  %v1727_v44 = vadd.f32 %v2225_v38, %v1719_v39 }
 0xa5a   : > { %v1720_v45 = vmul.f32 %v2224_v36, %v1712_v42  ;;  %2359 = vmatprep.mubr.msk.f32.mxu1 %vm778_vm1, %v1727_v44  ;;  %v2235_v36 = vld [vmem:[%s3095_s24] ss:$0 sm:$0xff] (!%p2234_p6) }
 0xa5c   : > { %v1728_v46 = vadd.f32 %v2225_v38, %v1720_v45  ;;  %v2236_v38 = vld [vmem:[%s3096_s20] ss:$0 sm:$0xff] (!%p2234_p6) }
 0xa5e   : > { %2360 = vmatmul.mubr.msk.f32.vlgmr.msra.gmra.mrb[12].mxu1 %vm778_vm1, %v1728_v46 }
 0xb31   : > { %v2361_v58 = vpop.f32.mrb[12].mxu1 }
 0xb32   : > { %v1818_v59 = vadd.f32 %v2361_v58, %v2226_v43  ;;  %v1812_v60 = vpop.f32.mrb[13].mxu1 }
 0xb33   : > { %v1813_v61 = vadd.f32 %v2226_v43, %v1812_v60 }
 0xb34   : > { %v2230_v62 = vmul.f32 -1.702, %v1818_v59 }
 0xb35   : > { %v2229_v63 = vmul.f32 -1.702, %v1813_v61 }
 0xb36   : > { %v1827_v0 = vmul.f32 1.442695, %v2230_v62 }
 0xb37   : > { %v1825_v1 = vmul.f32 1.442695, %v2229_v63 }
 0xb38   : > { %2499 = vpow2.f32 %v1827_v0 }
 0xb39   : > { %2501 = vpow2.f32 %v1825_v1 }
 0xb42   : > { %v2500_v4 = vpop.eup %2499 }
 0xb43   : > { %v2502_v5 = vpop.eup %2501  ;;  %v1830_v6 = vadd.f32 1.0, %v2500_v4 }
 0xb44   : > { %v1829_v7 = vadd.f32 1.0, %v2502_v5 }
 0xb45   : > { %2503 = vrcp.f32 %v1830_v6 }
 0xb46   : > { %2505 = vrcp.f32 %v1829_v7 }
 0xb4f   : > { %v2504_v8 = vpop.eup %2503 }
 0xb50   : > { %v2506_v9 = vpop.eup %2505  ;;  %v1836_v13 = vmul.f32 %v2504_v8, %v1818_v59 }
 0xb51   : > { %v1835_v10 = vmul.f32 %v2506_v9, %v1813_v61 }
 0xb53   : > { %2378 = vmatprep.mubr.msk.f32.mxu0 %vm1845_vm7, %v1835_v10 }
 0xb54   : > { %2379 = vmatmul.mubr.msk.f32.vlgmr.msra.gmra.mrb[8].mxu0 %vm1845_vm7, %v1836_v13 }
 0xc27   : > { %v2380_v14 = vpop.f32.mrb[8].mxu0  ;;  %1943 = sbr.rel (%p2234_p6) target bundleno = 3435 (0xd6b), region = 96 }
 0xc28   : > { %v1928_v16 = vadd.f32 %v2380_v14, %v2945_v11  ;;  %v1918_v3 = vpop.f32.mrb[9].mxu0 }
 0xc29   : > { %v1927_v2 = vadd.f32 %v1918_v3, %v2947_v12 }
 0xc2a   : > { %v1937_v17 = vadd.f32 %v2233_v15, %v1928_v16 }
 0xc2b   : > { %v1936_v18 = vadd.f32 %v2233_v15, %v1927_v2 }
 0xc2c   : > { %1939 = vst.msk [vmem:[#allocation2 + $0x8] sm:$0xff] %vm778_vm1, %v1937_v17  ;;  %v1949_v20 = vsel (!%p2234_p6), %vm778_vm1, %v1937_v17, 0.0 }
 0xc2d   : > { %1938 = vst.msk [vmem:[#allocation2] sm:$0xff] %vm778_vm1, %v1936_v18  ;;  %v1946_v19 = vsel (!%p2234_p6), %vm778_vm1, %v1936_v18, 0.0 }
 0xc2e   : > { %1947 = vadd.xlane.f32.xlu0 %v1946_v19 }
 0xc32   : > { %1950 = vadd.xlane.f32.xlu0 %v1949_v20 }
 0xcbb   : > { %v1948_v21 = vpop.xlane.xlu0 %1947 }
 0xcbc   : > { %v1952_v11 = vmul.f32 0.03125, %v1948_v21 }
 0xcbe   : > { %v1954_v22 = vsub.f32 %v1936_v18, %v1952_v11 }
 0xcbf   : > { %v1951_v23 = vpop.xlane.xlu0 %1950 }
 0xcc0   : > { %v1953_v12 = vmul.f32 0.03125, %v1951_v23  ;;  %v1956_v24 = vmul.f32 %v1954_v22, %v1954_v22 }
 0xcc2   : > { %v1955_v25 = vsub.f32 %v1937_v17, %v1953_v12  ;;  %v1958_v26 = vsel %vm778_vm1, %v1956_v24, 0.0 }
 0xcc3   : > { %1959 = vadd.xlane.f32.xlu1 %v1958_v26 }
 0xcc4   : > { %v1957_v27 = vmul.f32 %v1955_v25, %v1955_v25 }
 0xcc6   : > { %v1961_v28 = vsel %vm778_vm1, %v1957_v27, 0.0 }
 0xcc7   : > { %1962 = vadd.xlane.f32.xlu1 %v1961_v28 }
 0xd50   : > { %v1960_v29 = vpop.xlane.xlu1 %1959 }
 0xd51   : > { %v1964_v30 = vmul.f32 0.03125, %v1960_v29 }
 0xd53   : > { %v1966_v31 = vadd.f32 1e-05, %v1964_v30 }
 0xd54   : > { %v1963_v32 = vpop.xlane.xlu1 %1962 }
 0xd55   : > { %2507 = vrsqrt.f32 %v1966_v31  ;;  %v1965_v33 = vmul.f32 0.03125, %v1963_v32 }
 0xd57   : > { %v1967_v34 = vadd.f32 1e-05, %v1965_v33 }
 0xd59   : > { %2509 = vrsqrt.f32 %v1967_v34 }
 0xd5f   : > { %v2508_v35 = vpop.eup %2507 }
 0xd60   : > { %v1970_v37 = vmul.f32 %v2508_v35, %v1954_v22 }
 0xd62   : > { %v1978_v39 = vmul.f32 %v2235_v36, %v1970_v37 }
 0xd63   : > { %v2510_v40 = vpop.eup %2509 }
 0xd64   : > { %v1986_v42 = vadd.f32 %v2236_v38, %v1978_v39  ;;  %v1971_v44 = vmul.f32 %v2510_v40, %v1955_v25 }
 0xd66   : > { %1988 = vst.msk [vmem:[#allocation7] sm:$0xff] %vm778_vm1, %v1986_v42  ;;  %v1979_v45 = vmul.f32 %v2235_v36, %v1971_v44 }
 0xd68   : > { %v1987_v46 = vadd.f32 %v2236_v38, %v1979_v45 }
 0xd6a   : > { %1989 = vst.msk [vmem:[#allocation7 + $0x8] sm:$0xff] %vm778_vm1, %v1987_v46 }
 0xd6b PF: > { %s3097_s25 = sld [smem:[#allocation11_spill]]  ;;  %s2608_s15 = smov [#allocation7]  }
 0xd6c   : > { %s1999_s26 = sshll.u32 %s2608_s15, 4  ;;  %s2000_s26 = int_to_ptr.vmem [resolvable:$true] %s1999_s26 }
 0xd6d   : > { %s2539_s19 = scalar_lea.vmem %s2000_s26, 256  ;;  %p2546_p13 = scmp.lt.s32.totalorder %s2000_s26, %s2000_s26 }
 0xd6e   : > { %p2540_p10 = scmp.ne.s32.totalorder %s2000_s26, %s2539_s19  ;;  %p2547_p0 = scmp.lt.s32.totalorder %s2539_s19, %s2539_s19 }
 0xd70   : > { %p2548_p1 = por %p2547_p0, %p2546_p13 }
 0xd71   : > { %s3098_s16 = sadd.s32 4294967295, %s3097_s25  }
 0xd72   : > { %p3010_p8 = scmp.eq.s32.totalorder %s3098_s16, 1 }
 0xd74   : > { %p2541_p11 = pnand %p2540_p10, %p3010_p8 }
 0xd76   : > { %p2542_p12 = pneg %p2541_p11 }
 0xd78   : > { %p2549_p2 = pnand %p2548_p1, %p2542_p12 }
 0xd7a   : > { %2552 = shalt.err (!%p2549_p2)
}
 0xd7b   : > { %s3100_s4 = sld [smem:[#allocation19_spill]] }
 0xd81   : > { %s2553_s28 = scalar_lea.hbm %s3100_s4, 256 }
 0xd82   : > { %p2554_p5 = scmp.ne.s32.totalorder %s3100_s4, %s2553_s28  ;;  %p2559_p3 = scmp.lt.u32.totalorder %s2553_s28, %s3100_s4 }
 0xd84   : > { %p2555_p7 = pnand %p2554_p5, %p3010_p8 }
 0xd86   : > { %p2556_p9 = pneg %p2555_p7 }
 0xd88   : > { %p2561_p4 = pnand %p2559_p3, %p2556_p9 }
 0xd8a   : > { %2564 = shalt.err (!%p2561_p4)
}
 0xd8b   : > { %s2609_s21 = smov 128   ;;  %s2610_s22 = smov 8  }
 0xd8c   : > { %2426 = dma.vmem_to_hbm [thread:$0]  (%p3010_p8), %s2000_s26, 256, %s3100_s4, [#allocation6], %s2609_s21, %s2609_s21, %s2610_s22  }
 0xd8d   : > { %2582 = dma.done.wait (%p3010_p8), [#allocation6], 256  }
 0xd8e   : > { %2584 = vsyncadd (%p3010_p8), [#allocation6], 4294967040 }
 0xd8f PF: > { %s3101_s30 = sld [smem:[#allocation11_spill]]  ;;  %s3102_s21 = sld [smem:[#allocation10_spill]] }
 0xd90   : > { %s3103_s22 = sld [smem:[#allocation12_spill]] }
 0xd95   : > { %s28_s23 = sadd.s32 1, %s3101_s30  }
 0xd96   : > { %p25_p6 = scmp.ge.s32.totalorder %s28_s23, 4  }
 0xd98   :  { %27 = sbr.rel (!%p25_p6) target bundleno = 10 (0xa), region = 162 }
 0xd9f   :  { %2015 = vsyncpa [#allocation5], 1 }
 0xda0   :  { %2017 = vsyncpa [#allocation5 + $0x1], 1 }
 0xda1   :  { %2018 = vsyncpa [#allocation6], 1 }
 0xda2   :  { %2020 = vsyncpa [#allocation6 + $0x1], 1 }

</bundles_post_ra>
